<compile_context>
chip_gen: v7x
topology: tpu7x:2x2x1
jax: 0.10.0
libtpu: 0.0.40
codegen_flags: <defaults>
</compile_context>

<pallas_src>
import functools
import math

import jax
import jax.numpy as jnp
from jax.experimental import pallas as pl
from jax.experimental.pallas import tpu as pltpu


# ----------------- in-kernel building blocks (jnp on VMEM-resident tiles) -----------------

def _layer_norm(x, gamma, beta, eps):
    """x: (S, D) f32; statistics kept in f32."""
    mean = jnp.mean(x, axis=-1, keepdims=True)
    var = jnp.mean((x - mean) ** 2, axis=-1, keepdims=True)
    return (x - mean) * jax.lax.rsqrt(var + eps) * gamma + beta


def _mha(x_q, x_kv, mask_bias, wq, bq, wk, bk, wv, bv, wo, bo, num_heads):
    """Multi-head attention for one batch element.

    x_q: (Sq, D) bf16 (already layer-normed), x_kv: (Sk, D) bf16,
    mask_bias: (Sq, Sk) f32 additive bias (0 = keep, -1e9 = masked).
    Weights bf16, biases f32; returns (Sq, D) f32.
    """
    d_model = wq.shape[0]
    dh = d_model // num_heads
    scale = 1.0 / math.sqrt(dh)

    q = jnp.dot(x_q, wq, preferred_element_type=jnp.float32) + bq      # (Sq, D) f32
    k = jnp.dot(x_kv, wk, preferred_element_type=jnp.float32) + bk     # (Sk, D) f32
    v = jnp.dot(x_kv, wv, preferred_element_type=jnp.float32) + bv     # (Sk, D) f32
    q = q * scale                        # fold 1/sqrt(dh) once, outside the head loop

    # Per-head attention accumulated through the output projection:
    #   acc += softmax(q_h k_h^T + bias) v_h @ wo[h*dh:(h+1)*dh, :]
    # -> no lane-axis concatenate; the (Sq, D) accumulation / store stays lane-dense.
    # TODO(synk): for long sequences tile Sk with an online-softmax (flash-style)
    # accumulator, and batch >=4 heads per MXU contraction on v6e/v7x.
    acc = None
    for h in range(num_heads):           # static unroll over heads
        sl = slice(h * dh, (h + 1) * dh)
        qh = q[:, sl].astype(jnp.bfloat16)
        kh = k[:, sl].astype(jnp.bfloat16)
        vh = v[:, sl].astype(jnp.bfloat16)
        scores = jnp.einsum("qd,kd->qk", qh, kh,
                            preferred_element_type=jnp.float32) + mask_bias
        m = jnp.max(scores, axis=-1, keepdims=True)
        p = jnp.exp(scores - m)
        denom = jnp.sum(p, axis=-1, keepdims=True)
        p = p * pl.reciprocal(denom, approx=True)     # EUP slot, not a VALU divide
        ctx_h = jnp.dot(p.astype(jnp.bfloat16), vh,
                        preferred_element_type=jnp.float32)            # (Sq, dh)
        contrib = jnp.dot(ctx_h.astype(jnp.bfloat16), wo[sl, :],
                          preferred_element_type=jnp.float32)          # (Sq, D)
        acc = contrib if acc is None else acc + contrib
    return acc + bo


def _ffn(x, w1, b1, w2, b2):
    """x: (S, D) bf16; w1/w2 bf16, biases f32; ReLU; f32 accumulation."""
    h = jnp.dot(x, w1, preferred_element_type=jnp.float32) + b1
    h = jnp.maximum(h, 0.0).astype(jnp.bfloat16)
    return jnp.dot(h, w2, preferred_element_type=jnp.float32) + b2


# --------------------------- fused decode-layer kernel ---------------------------

def _decode_layer_kernel(
        x_ref, enc_ref, src_mask_ref, tgt_mask_ref,
        ln1_g_ref, ln1_b_ref, ln2_g_ref, ln2_b_ref, ln3_g_ref, ln3_b_ref,
        wq1_ref, bq1_ref, wk1_ref, bk1_ref, wv1_ref, bv1_ref, wo1_ref, bo1_ref,
        wq2_ref, bq2_ref, wk2_ref, bk2_ref, wv2_ref, bv2_ref, wo2_ref, bo2_ref,
        fw1_ref, fb1_ref, fw2_ref, fb2_ref,
        o_ref, *, num_heads, eps, residual_method):
    x = x_ref[0]                                    # (Sq, D) f32
    enc = enc_ref[0]                                # (Se, D) bf16
    zero = jnp.float32(0.0)
    neg = jnp.float32(-1e9)
    src_bias = jnp.where(src_mask_ref[0] > 0.0, zero, neg)   # hoisted mask compare

    attn1 = (wq1_ref[...], bq1_ref[...], wk1_ref[...], bk1_ref[...],
             wv1_ref[...], bv1_ref[...], wo1_ref[...], bo1_ref[...])
    attn2 = (wq2_ref[...], bq2_ref[...], wk2_ref[...], bk2_ref[...],
             wv2_ref[...], bv2_ref[...], wo2_ref[...], bo2_ref[...])
    ffn = (fw1_ref[...], fb1_ref[...], fw2_ref[...], fb2_ref[...])

    if residual_method == "pre_norm":
        tgt_bias = jnp.where(tgt_mask_ref[0] > 0.0, zero, neg)
        xn1 = _layer_norm(x, ln1_g_ref[...], ln1_b_ref[...], eps).astype(jnp.bfloat16)
        x1 = x + _mha(xn1, xn1, tgt_bias, *attn1, num_heads=num_heads)
        xn2 = _layer_norm(x1, ln2_g_ref[...], ln2_b_ref[...], eps).astype(jnp.bfloat16)
        x2 = x1 + _mha(xn2, enc, src_bias, *attn2, num_heads=num_heads)
        xn3 = _layer_norm(x2, ln3_g_ref[...], ln3_b_ref[...], eps).astype(jnp.bfloat16)
        out = x2 + _ffn(xn3, *ffn)
    else:  # post_norm — mirrors the reference, where dropout_1(x) replaces the
           # self-attention output (identity dropout => attention_1/tgt_mask unused).
        x_res_1 = x + x
        xn1 = _layer_norm(x_res_1, ln1_g_ref[...], ln1_b_ref[...], eps)
        x_res_2 = xn1 + _mha(xn1.astype(jnp.bfloat16), enc, src_bias,
                             *attn2, num_heads=num_heads)
        xn2 = _layer_norm(x_res_2, ln2_g_ref[...], ln2_b_ref[...], eps)
        x_res_3 = xn2 + _ffn(xn2.astype(jnp.bfloat16), *ffn)
        out = _layer_norm(x_res_3, ln3_g_ref[...], ln3_b_ref[...], eps)

    o_ref[0] = out.astype(o_ref.dtype)


# ------------------------------------ wrapper ------------------------------------

def decode_layer(x, encode_x, src_mask, tgt_mask, params, num_heads,
                 residual_method="pre_norm", eps=1e-6):
    # TODO(synk): dropout RNG (training mode) not implemented; eval semantics only.
    if residual_method not in ("pre_norm", "post_norm"):
        raise ValueError(f"`residual_method` not support {residual_method}")

    B, Sq, D = x.shape
    Se = encode_x.shape[1]
    wq1, bq1, wk1, bk1, wv1, bv1, wo1, bo1 = params["attn1"]
    wq2, bq2, wk2, bk2, wv2, bv2, wo2, bo2 = params["attn2"]
    w1, fb1, w2, fb2 = params["ffn"]
    d_ff = w1.shape[1]

    bf16 = lambda a: a.astype(jnp.bfloat16)

    vec = lambda d: pl.BlockSpec((1, d), lambda b: (0, 0))
    mat = lambda m, n: pl.BlockSpec((m, n), lambda b: (0, 0))
    attn_specs = [mat(D, D), vec(D)] * 4            # wq,bq,wk,bk,wv,bv,wo,bo

    in_specs = (
        [pl.BlockSpec((1, Sq, D), lambda b: (b, 0, 0)),
         pl.BlockSpec((1, Se, D), lambda b: (b, 0, 0)),
         pl.BlockSpec((1, Sq, Se), lambda b: (b, 0, 0)),
         pl.BlockSpec((1, Sq, Sq), lambda b: (b, 0, 0))]
        + [vec(D)] * 6                               # ln1/ln2/ln3 gamma, beta
        + attn_specs * 2                             # attention_1, attention_2
        + [mat(D, d_ff), vec(d_ff), mat(d_ff, D), vec(D)]   # ffn
    )

    args = (
        x, bf16(encode_x), src_mask, tgt_mask,
        *params["ln1"], *params["ln2"], *params["ln3"],
        bf16(wq1), bq1, bf16(wk1), bk1, bf16(wv1), bv1, bf16(wo1), bo1,
        bf16(wq2), bq2, bf16(wk2), bk2, bf16(wv2), bv2, bf16(wo2), bo2,
        bf16(w1), fb1, bf16(w2), fb2,
    )

    return pl.pallas_call(
        functools.partial(_decode_layer_kernel, num_heads=num_heads, eps=eps,
                          residual_method=residual_method),
        out_shape=jax.ShapeDtypeStruct((B, Sq, D), x.dtype),
        grid_spec=pltpu.PrefetchScalarGridSpec(
            num_scalar_prefetch=0,
            grid=(B,),
            in_specs=in_specs,
            out_specs=pl.BlockSpec((1, Sq, D), lambda b: (b, 0, 0)),
        ),
        compiler_params=pltpu.CompilerParams(
            dimension_semantics=("parallel",)),      # lets v7x shard batch over 2 TCs
    )(*args)


# ------------------------------- parameter init ----------------------------------

def init_decode_layer_params(key, num_heads, d_model, d_ff):
    ks = jax.random.split(key, 12)
    s = 1.0 / math.sqrt(d_model)
    sf = 1.0 / math.sqrt(d_ff)

    def lin(k, din, dout, scale):
        return (jax.random.normal(k, (din, dout), jnp.float32) * scale,
                jnp.zeros((1, dout), jnp.float32))

    attn1 = sum((lin(ks[i], d_model, d_model, s) for i in range(4)), ())
    attn2 = sum((lin(ks[4 + i], d_model, d_model, s) for i in range(4)), ())
    w1, b1 = lin(ks[8], d_model, d_ff, s)
    w2, b2 = lin(ks[9], d_ff, d_model, sf)
    ffn = (w1, b1, w2, b2)
    ln = lambda: (jnp.ones((1, d_model), jnp.float32),
                  jnp.zeros((1, d_model), jnp.float32))
    return dict(attn1=attn1, attn2=attn2, ffn=ffn, ln1=ln(), ln2=ln(), ln3=ln())


if __name__ == "__main__":
    B, S_tgt, S_src = 2, 8, 8
    num_heads, d_model, d_ff = 4, 32, 64

    key = jax.random.PRNGKey(0)
    k_x, k_enc, k_params = jax.random.split(key, 3)

    x = jax.random.normal(k_x, (B, S_tgt, d_model), jnp.float32)
    encode_x = jax.random.normal(k_enc, (B, S_src, d_model), jnp.float32)

    # tgt_mask: causal (B, S_tgt, S_tgt); src_mask: all-visible (B, S_tgt, S_src)
    causal = jnp.tril(jnp.ones((S_tgt, S_tgt), jnp.float32))
    tgt_mask = jnp.broadcast_to(causal, (B, S_tgt, S_tgt))
    src_mask = jnp.ones((B, S_tgt, S_src), jnp.float32)

    params = init_decode_layer_params(k_params, num_heads, d_model, d_ff)

    out = decode_layer(x, encode_x, src_mask, tgt_mask, params, num_heads,
                       residual_method="pre_norm")
    jax.block_until_ready(out)
    assert out.shape == (B, S_tgt, d_model)
    print("KERNEL_OK")
</pallas_src>

<mosaic_0001>
module attributes {stable_mosaic.version = 11 : i64} {
  func.func @_decode_layer_kernel(%arg0: i32, %arg1: memref<1x8x32xf32, #tpu.memory_space<vmem>>, %arg2: memref<1x8x32xbf16, #tpu.memory_space<vmem>>, %arg3: memref<1x8x8xf32, #tpu.memory_space<vmem>>, %arg4: memref<1x8x8xf32, #tpu.memory_space<vmem>>, %arg5: memref<1x32xf32, #tpu.memory_space<vmem>>, %arg6: memref<1x32xf32, #tpu.memory_space<vmem>>, %arg7: memref<1x32xf32, #tpu.memory_space<vmem>>, %arg8: memref<1x32xf32, #tpu.memory_space<vmem>>, %arg9: memref<1x32xf32, #tpu.memory_space<vmem>>, %arg10: memref<1x32xf32, #tpu.memory_space<vmem>>, %arg11: memref<32x32xbf16, #tpu.memory_space<vmem>>, %arg12: memref<1x32xf32, #tpu.memory_space<vmem>>, %arg13: memref<32x32xbf16, #tpu.memory_space<vmem>>, %arg14: memref<1x32xf32, #tpu.memory_space<vmem>>, %arg15: memref<32x32xbf16, #tpu.memory_space<vmem>>, %arg16: memref<1x32xf32, #tpu.memory_space<vmem>>, %arg17: memref<32x32xbf16, #tpu.memory_space<vmem>>, %arg18: memref<1x32xf32, #tpu.memory_space<vmem>>, %arg19: memref<32x32xbf16, #tpu.memory_space<vmem>>, %arg20: memref<1x32xf32, #tpu.memory_space<vmem>>, %arg21: memref<32x32xbf16, #tpu.memory_space<vmem>>, %arg22: memref<1x32xf32, #tpu.memory_space<vmem>>, %arg23: memref<32x32xbf16, #tpu.memory_space<vmem>>, %arg24: memref<1x32xf32, #tpu.memory_space<vmem>>, %arg25: memref<32x32xbf16, #tpu.memory_space<vmem>>, %arg26: memref<1x32xf32, #tpu.memory_space<vmem>>, %arg27: memref<32x64xbf16, #tpu.memory_space<vmem>>, %arg28: memref<1x64xf32, #tpu.memory_space<vmem>>, %arg29: memref<64x32xbf16, #tpu.memory_space<vmem>>, %arg30: memref<1x32xf32, #tpu.memory_space<vmem>>, %arg31: memref<1x8x32xf32, #tpu.memory_space<vmem>>) attributes {dimension_semantics = [#tpu.dimension_semantics<parallel>], iteration_bounds = array<i64: 2>, scalar_prefetch = 0 : i64, scratch_operands = 0 : i64, tpu.core_type = #tpu.core_type<tc>, window_params = [{transform_indices = @transform_0, window_bounds = array<i64: 1, 8, 32>}, {transform_indices = @transform_1, window_bounds = array<i64: 1, 8, 32>}, {transform_indices = @transform_2, window_bounds = array<i64: 1, 8, 8>}, {transform_indices = @transform_3, window_bounds = array<i64: 1, 8, 8>}, {pipeline_mode = #tpu.pipeline_mode<synchronous>, transform_indices = @transform_4, window_bounds = array<i64: 1, 32>}, {pipeline_mode = #tpu.pipeline_mode<synchronous>, transform_indices = @transform_5, window_bounds = array<i64: 1, 32>}, {pipeline_mode = #tpu.pipeline_mode<synchronous>, transform_indices = @transform_6, window_bounds = array<i64: 1, 32>}, {pipeline_mode = #tpu.pipeline_mode<synchronous>, transform_indices = @transform_7, window_bounds = array<i64: 1, 32>}, {pipeline_mode = #tpu.pipeline_mode<synchronous>, transform_indices = @transform_8, window_bounds = array<i64: 1, 32>}, {pipeline_mode = #tpu.pipeline_mode<synchronous>, transform_indices = @transform_9, window_bounds = array<i64: 1, 32>}, {pipeline_mode = #tpu.pipeline_mode<synchronous>, transform_indices = @transform_10, window_bounds = array<i64: 32, 32>}, {pipeline_mode = #tpu.pipeline_mode<synchronous>, transform_indices = @transform_11, window_bounds = array<i64: 1, 32>}, {pipeline_mode = #tpu.pipeline_mode<synchronous>, transform_indices = @transform_12, window_bounds = array<i64: 32, 32>}, {pipeline_mode = #tpu.pipeline_mode<synchronous>, transform_indices = @transform_13, window_bounds = array<i64: 1, 32>}, {pipeline_mode = #tpu.pipeline_mode<synchronous>, transform_indices = @transform_14, window_bounds = array<i64: 32, 32>}, {pipeline_mode = #tpu.pipeline_mode<synchronous>, transform_indices = @transform_15, window_bounds = array<i64: 1, 32>}, {pipeline_mode = #tpu.pipeline_mode<synchronous>, transform_indices = @transform_16, window_bounds = array<i64: 32, 32>}, {pipeline_mode = #tpu.pipeline_mode<synchronous>, transform_indices = @transform_17, window_bounds = array<i64: 1, 32>}, {pipeline_mode = #tpu.pipeline_mode<synchronous>, transform_indices = @transform_18, window_bounds = array<i64: 32, 32>}, {pipeline_mode = #tpu.pipeline_mode<synchronous>, transform_indices = @transform_19, window_bounds = array<i64: 1, 32>}, {pipeline_mode = #tpu.pipeline_mode<synchronous>, transform_indices = @transform_20, window_bounds = array<i64: 32, 32>}, {pipeline_mode = #tpu.pipeline_mode<synchronous>, transform_indices = @transform_21, window_bounds = array<i64: 1, 32>}, {pipeline_mode = #tpu.pipeline_mode<synchronous>, transform_indices = @transform_22, window_bounds = array<i64: 32, 32>}, {pipeline_mode = #tpu.pipeline_mode<synchronous>, transform_indices = @transform_23, window_bounds = array<i64: 1, 32>}, {pipeline_mode = #tpu.pipeline_mode<synchronous>, transform_indices = @transform_24, window_bounds = array<i64: 32, 32>}, {pipeline_mode = #tpu.pipeline_mode<synchronous>, transform_indices = @transform_25, window_bounds = array<i64: 1, 32>}, {pipeline_mode = #tpu.pipeline_mode<synchronous>, transform_indices = @transform_26, window_bounds = array<i64: 32, 64>}, {pipeline_mode = #tpu.pipeline_mode<synchronous>, transform_indices = @transform_27, window_bounds = array<i64: 1, 64>}, {pipeline_mode = #tpu.pipeline_mode<synchronous>, transform_indices = @transform_28, window_bounds = array<i64: 64, 32>}, {pipeline_mode = #tpu.pipeline_mode<synchronous>, transform_indices = @transform_29, window_bounds = array<i64: 1, 32>}, {transform_indices = @transform_30, window_bounds = array<i64: 1, 8, 32>}]} {
    %c0 = arith.constant 0 : index
    %c0_0 = arith.constant 0 : index
    %c0_1 = arith.constant 0 : index
    %0 = vector.load %arg1[%c0, %c0_0, %c0_1] : memref<1x8x32xf32, #tpu.memory_space<vmem>>, vector<1x8x32xf32>
    %1 = vector.shape_cast %0 : vector<1x8x32xf32> to vector<8x32xf32>
    %c0_2 = arith.constant 0 : index
    %c0_3 = arith.constant 0 : index
    %c0_4 = arith.constant 0 : index
    %2 = vector.load %arg2[%c0_2, %c0_3, %c0_4] : memref<1x8x32xbf16, #tpu.memory_space<vmem>>, vector<1x8x32xbf16>
    %3 = vector.shape_cast %2 : vector<1x8x32xbf16> to vector<8x32xbf16>
    %c0_5 = arith.constant 0 : index
    %c0_6 = arith.constant 0 : index
    %c0_7 = arith.constant 0 : index
    %4 = vector.load %arg3[%c0_5, %c0_6, %c0_7] : memref<1x8x8xf32, #tpu.memory_space<vmem>>, vector<1x8x8xf32>
    %5 = vector.shape_cast %4 : vector<1x8x8xf32> to vector<8x8xf32>
    %cst = arith.constant 0.000000e+00 : f32
    %6 = vector.broadcast %cst : f32 to vector<8x8xf32>
    %7 = arith.cmpf ogt, %5, %6 : vector<8x8xf32>
    %cst_8 = arith.constant 0.000000e+00 : f32
    %cst_9 = arith.constant -1.000000e+09 : f32
    %8 = vector.broadcast %cst_8 : f32 to vector<8x8xf32>
    %9 = vector.broadcast %cst_9 : f32 to vector<8x8xf32>
    %10 = arith.select %7, %8, %9 : vector<8x8xi1>, vector<8x8xf32>
    %c0_10 = arith.constant 0 : index
    %c0_11 = arith.constant 0 : index
    %11 = vector.load %arg11[%c0_10, %c0_11] : memref<32x32xbf16, #tpu.memory_space<vmem>>, vector<32x32xbf16>
    %c0_12 = arith.constant 0 : index
    %c0_13 = arith.constant 0 : index
    %12 = vector.load %arg12[%c0_12, %c0_13] : memref<1x32xf32, #tpu.memory_space<vmem>>, vector<1x32xf32>
    %c0_14 = arith.constant 0 : index
    %c0_15 = arith.constant 0 : index
    %13 = vector.load %arg13[%c0_14, %c0_15] : memref<32x32xbf16, #tpu.memory_space<vmem>>, vector<32x32xbf16>
    %c0_16 = arith.constant 0 : index
    %c0_17 = arith.constant 0 : index
    %14 = vector.load %arg14[%c0_16, %c0_17] : memref<1x32xf32, #tpu.memory_space<vmem>>, vector<1x32xf32>
    %c0_18 = arith.constant 0 : index
    %c0_19 = arith.constant 0 : index
    %15 = vector.load %arg15[%c0_18, %c0_19] : memref<32x32xbf16, #tpu.memory_space<vmem>>, vector<32x32xbf16>
    %c0_20 = arith.constant 0 : index
    %c0_21 = arith.constant 0 : index
    %16 = vector.load %arg16[%c0_20, %c0_21] : memref<1x32xf32, #tpu.memory_space<vmem>>, vector<1x32xf32>
    %c0_22 = arith.constant 0 : index
    %c0_23 = arith.constant 0 : index
    %17 = vector.load %arg17[%c0_22, %c0_23] : memref<32x32xbf16, #tpu.memory_space<vmem>>, vector<32x32xbf16>
    %c0_24 = arith.constant 0 : index
    %c0_25 = arith.constant 0 : index
    %18 = vector.load %arg18[%c0_24, %c0_25] : memref<1x32xf32, #tpu.memory_space<vmem>>, vector<1x32xf32>
    %c0_26 = arith.constant 0 : index
    %c0_27 = arith.constant 0 : index
    %19 = vector.load %arg19[%c0_26, %c0_27] : memref<32x32xbf16, #tpu.memory_space<vmem>>, vector<32x32xbf16>
    %c0_28 = arith.constant 0 : index
    %c0_29 = arith.constant 0 : index
    %20 = vector.load %arg20[%c0_28, %c0_29] : memref<1x32xf32, #tpu.memory_space<vmem>>, vector<1x32xf32>
    %c0_30 = arith.constant 0 : index
    %c0_31 = arith.constant 0 : index
    %21 = vector.load %arg21[%c0_30, %c0_31] : memref<32x32xbf16, #tpu.memory_space<vmem>>, vector<32x32xbf16>
    %c0_32 = arith.constant 0 : index
    %c0_33 = arith.constant 0 : index
    %22 = vector.load %arg22[%c0_32, %c0_33] : memref<1x32xf32, #tpu.memory_space<vmem>>, vector<1x32xf32>
    %c0_34 = arith.constant 0 : index
    %c0_35 = arith.constant 0 : index
    %23 = vector.load %arg23[%c0_34, %c0_35] : memref<32x32xbf16, #tpu.memory_space<vmem>>, vector<32x32xbf16>
    %c0_36 = arith.constant 0 : index
    %c0_37 = arith.constant 0 : index
    %24 = vector.load %arg24[%c0_36, %c0_37] : memref<1x32xf32, #tpu.memory_space<vmem>>, vector<1x32xf32>
    %c0_38 = arith.constant 0 : index
    %c0_39 = arith.constant 0 : index
    %25 = vector.load %arg25[%c0_38, %c0_39] : memref<32x32xbf16, #tpu.memory_space<vmem>>, vector<32x32xbf16>
    %c0_40 = arith.constant 0 : index
    %c0_41 = arith.constant 0 : index
    %26 = vector.load %arg26[%c0_40, %c0_41] : memref<1x32xf32, #tpu.memory_space<vmem>>, vector<1x32xf32>
    %c0_42 = arith.constant 0 : index
    %c0_43 = arith.constant 0 : index
    %27 = vector.load %arg27[%c0_42, %c0_43] : memref<32x64xbf16, #tpu.memory_space<vmem>>, vector<32x64xbf16>
    %c0_44 = arith.constant 0 : index
    %c0_45 = arith.constant 0 : index
    %28 = vector.load %arg28[%c0_44, %c0_45] : memref<1x64xf32, #tpu.memory_space<vmem>>, vector<1x64xf32>
    %c0_46 = arith.constant 0 : index
    %c0_47 = arith.constant 0 : index
    %29 = vector.load %arg29[%c0_46, %c0_47] : memref<64x32xbf16, #tpu.memory_space<vmem>>, vector<64x32xbf16>
    %c0_48 = arith.constant 0 : index
    %c0_49 = arith.constant 0 : index
    %30 = vector.load %arg30[%c0_48, %c0_49] : memref<1x32xf32, #tpu.memory_space<vmem>>, vector<1x32xf32>
    %c0_50 = arith.constant 0 : index
    %c0_51 = arith.constant 0 : index
    %c0_52 = arith.constant 0 : index
    %31 = vector.load %arg4[%c0_50, %c0_51, %c0_52] : memref<1x8x8xf32, #tpu.memory_space<vmem>>, vector<1x8x8xf32>
    %32 = vector.shape_cast %31 : vector<1x8x8xf32> to vector<8x8xf32>
    %cst_53 = arith.constant 0.000000e+00 : f32
    %33 = vector.broadcast %cst_53 : f32 to vector<8x8xf32>
    %34 = arith.cmpf ogt, %32, %33 : vector<8x8xf32>
    %cst_54 = arith.constant 0.000000e+00 : f32
    %cst_55 = arith.constant -1.000000e+09 : f32
    %35 = vector.broadcast %cst_54 : f32 to vector<8x8xf32>
    %36 = vector.broadcast %cst_55 : f32 to vector<8x8xf32>
    %37 = arith.select %34, %35, %36 : vector<8x8xi1>, vector<8x8xf32>
    %c0_56 = arith.constant 0 : index
    %c0_57 = arith.constant 0 : index
    %38 = vector.load %arg5[%c0_56, %c0_57] : memref<1x32xf32, #tpu.memory_space<vmem>>, vector<1x32xf32>
    %c0_58 = arith.constant 0 : index
    %c0_59 = arith.constant 0 : index
    %39 = vector.load %arg6[%c0_58, %c0_59] : memref<1x32xf32, #tpu.memory_space<vmem>>, vector<1x32xf32>
    %cst_60 = arith.constant dense<0.000000e+00> : vector<8xf32>
    %40 = vector.multi_reduction <add>, %1, %cst_60 [1] : vector<8x32xf32> to vector<8xf32>
    %41 = vector.shape_cast %40 : vector<8xf32> to vector<8x1xf32>
    %cst_61 = arith.constant 3.200000e+01 : f32
    %42 = vector.broadcast %cst_61 : f32 to vector<8x1xf32>
    %43 = arith.divf %41, %42 : vector<8x1xf32>
    %44 = vector.broadcast %43 : vector<8x1xf32> to vector<8x32xf32>
    %45 = arith.subf %1, %44 : vector<8x32xf32>
    %46 = arith.mulf %45, %45 : vector<8x32xf32>
    %cst_62 = arith.constant dense<0.000000e+00> : vector<8xf32>
    %47 = vector.multi_reduction <add>, %46, %cst_62 [1] : vector<8x32xf32> to vector<8xf32>
    %48 = vector.shape_cast %47 : vector<8xf32> to vector<8x1xf32>
    %cst_63 = arith.constant 3.200000e+01 : f32
    %49 = vector.broadcast %cst_63 : f32 to vector<8x1xf32>
    %50 = arith.divf %48, %49 : vector<8x1xf32>
    %51 = vector.broadcast %43 : vector<8x1xf32> to vector<8x32xf32>
    %52 = arith.subf %1, %51 : vector<8x32xf32>
    %cst_64 = arith.constant 9.99999997E-7 : f32
    %53 = vector.broadcast %cst_64 : f32 to vector<8x1xf32>
    %54 = arith.addf %50, %53 : vector<8x1xf32>
    %55 = math.rsqrt %54 : vector<8x1xf32>
    %56 = vector.broadcast %55 : vector<8x1xf32> to vector<8x32xf32>
    %57 = arith.mulf %52, %56 : vector<8x32xf32>
    %58 = vector.broadcast %38 : vector<1x32xf32> to vector<8x32xf32>
    %59 = arith.mulf %57, %58 : vector<8x32xf32>
    %60 = vector.broadcast %39 : vector<1x32xf32> to vector<8x32xf32>
    %61 = arith.addf %59, %60 : vector<8x32xf32>
    %62 = arith.truncf %61 : vector<8x32xf32> to vector<8x32xbf16>
    %cst_65 = arith.constant dense<0.000000e+00> : vector<8x32xf32>
    %63 = tpu.matmul %62, %11, %cst_65 {dimension_numbers = #tpu.dot_dimension_numbers<[1], [0], [0], [1], [0, 0, 1, 1], [], []>} : vector<8x32xbf16>, vector<32x32xbf16>, vector<8x32xf32> -> vector<8x32xf32>
    %64 = vector.broadcast %12 : vector<1x32xf32> to vector<8x32xf32>
    %65 = arith.addf %63, %64 : vector<8x32xf32>
    %cst_66 = arith.constant dense<0.000000e+00> : vector<8x32xf32>
    %66 = tpu.matmul %62, %13, %cst_66 {dimension_numbers = #tpu.dot_dimension_numbers<[1], [0], [0], [1], [0, 0, 1, 1], [], []>} : vector<8x32xbf16>, vector<32x32xbf16>, vector<8x32xf32> -> vector<8x32xf32>
    %67 = vector.broadcast %14 : vector<1x32xf32> to vector<8x32xf32>
    %68 = arith.addf %66, %67 : vector<8x32xf32>
    %cst_67 = arith.constant dense<0.000000e+00> : vector<8x32xf32>
    %69 = tpu.matmul %62, %15, %cst_67 {dimension_numbers = #tpu.dot_dimension_numbers<[1], [0], [0], [1], [0, 0, 1, 1], [], []>} : vector<8x32xbf16>, vector<32x32xbf16>, vector<8x32xf32> -> vector<8x32xf32>
    %70 = vector.broadcast %16 : vector<1x32xf32> to vector<8x32xf32>
    %71 = arith.addf %69, %70 : vector<8x32xf32>
    %cst_68 = arith.constant 0.353553385 : f32
    %72 = vector.broadcast %cst_68 : f32 to vector<8x32xf32>
    %73 = arith.mulf %65, %72 : vector<8x32xf32>
    %74 = vector.extract_strided_slice %73 {offsets = [0, 0], sizes = [8, 8], strides = [1, 1]} : vector<8x32xf32> to vector<8x8xf32>
    %75 = arith.truncf %74 : vector<8x8xf32> to vector<8x8xbf16>
    %76 = vector.extract_strided_slice %68 {offsets = [0, 0], sizes = [8, 8], strides = [1, 1]} : vector<8x32xf32> to vector<8x8xf32>
    %77 = arith.truncf %76 : vector<8x8xf32> to vector<8x8xbf16>
    %78 = vector.extract_strided_slice %71 {offsets = [0, 0], sizes = [8, 8], strides = [1, 1]} : vector<8x32xf32> to vector<8x8xf32>
    %79 = arith.truncf %78 : vector<8x8xf32> to vector<8x8xbf16>
    "tpu.trace_start"() <{level = 10 : i32, message = "qd,kd->qk"}> : () -> ()
    %cst_69 = arith.constant dense<0.000000e+00> : vector<8x8xf32>
    %80 = tpu.matmul %75, %77, %cst_69 {dimension_numbers = #tpu.dot_dimension_numbers<[1], [1], [0], [0], [0, 0, 1, 0], [], []>} : vector<8x8xbf16>, vector<8x8xbf16>, vector<8x8xf32> -> vector<8x8xf32>
    "tpu.trace_stop"() : () -> ()
    %81 = arith.addf %80, %37 : vector<8x8xf32>
    %cst_70 = arith.constant dense<0xFF800000> : vector<8xf32>
    %82 = vector.multi_reduction <maximumf>, %81, %cst_70 [1] : vector<8x8xf32> to vector<8xf32>
    %83 = vector.shape_cast %82 : vector<8xf32> to vector<8x1xf32>
    %84 = vector.broadcast %83 : vector<8x1xf32> to vector<8x8xf32>
    %85 = arith.subf %81, %84 : vector<8x8xf32>
    %86 = math.exp %85 : vector<8x8xf32>
    %cst_71 = arith.constant dense<0.000000e+00> : vector<8xf32>
    %87 = vector.multi_reduction <add>, %86, %cst_71 [1] : vector<8x8xf32> to vector<8xf32>
    %88 = vector.shape_cast %87 : vector<8xf32> to vector<8x1xf32>
    %89 = tpu.reciprocal %88 {approx = true} : vector<8x1xf32> -> vector<8x1xf32>
    %90 = vector.broadcast %89 : vector<8x1xf32> to vector<8x8xf32>
    %91 = arith.mulf %86, %90 : vector<8x8xf32>
    %92 = arith.truncf %91 : vector<8x8xf32> to vector<8x8xbf16>
    %cst_72 = arith.constant dense<0.000000e+00> : vector<8x8xf32>
    %93 = tpu.matmul %92, %79, %cst_72 {dimension_numbers = #tpu.dot_dimension_numbers<[1], [0], [0], [1], [0, 0, 1, 1], [], []>} : vector<8x8xbf16>, vector<8x8xbf16>, vector<8x8xf32> -> vector<8x8xf32>
    %94 = arith.truncf %93 : vector<8x8xf32> to vector<8x8xbf16>
    %95 = vector.extract_strided_slice %17 {offsets = [0, 0], sizes = [8, 32], strides = [1, 1]} : vector<32x32xbf16> to vector<8x32xbf16>
    %cst_73 = arith.constant dense<0.000000e+00> : vector<8x32xf32>
    %96 = tpu.matmul %94, %95, %cst_73 {dimension_numbers = #tpu.dot_dimension_numbers<[1], [0], [0], [1], [0, 0, 1, 1], [], []>} : vector<8x8xbf16>, vector<8x32xbf16>, vector<8x32xf32> -> vector<8x32xf32>
    %97 = vector.extract_strided_slice %73 {offsets = [0, 8], sizes = [8, 8], strides = [1, 1]} : vector<8x32xf32> to vector<8x8xf32>
    %98 = arith.truncf %97 : vector<8x8xf32> to vector<8x8xbf16>
    %99 = vector.extract_strided_slice %68 {offsets = [0, 8], sizes = [8, 8], strides = [1, 1]} : vector<8x32xf32> to vector<8x8xf32>
    %100 = arith.truncf %99 : vector<8x8xf32> to vector<8x8xbf16>
    %101 = vector.extract_strided_slice %71 {offsets = [0, 8], sizes = [8, 8], strides = [1, 1]} : vector<8x32xf32> to vector<8x8xf32>
    %102 = arith.truncf %101 : vector<8x8xf32> to vector<8x8xbf16>
    "tpu.trace_start"() <{level = 10 : i32, message = "qd,kd->qk"}> : () -> ()
    %cst_74 = arith.constant dense<0.000000e+00> : vector<8x8xf32>
    %103 = tpu.matmul %98, %100, %cst_74 {dimension_numbers = #tpu.dot_dimension_numbers<[1], [1], [0], [0], [0, 0, 1, 0], [], []>} : vector<8x8xbf16>, vector<8x8xbf16>, vector<8x8xf32> -> vector<8x8xf32>
    "tpu.trace_stop"() : () -> ()
    %104 = arith.addf %103, %37 : vector<8x8xf32>
    %cst_75 = arith.constant dense<0xFF800000> : vector<8xf32>
    %105 = vector.multi_reduction <maximumf>, %104, %cst_75 [1] : vector<8x8xf32> to vector<8xf32>
    %106 = vector.shape_cast %105 : vector<8xf32> to vector<8x1xf32>
    %107 = vector.broadcast %106 : vector<8x1xf32> to vector<8x8xf32>
    %108 = arith.subf %104, %107 : vector<8x8xf32>
    %109 = math.exp %108 : vector<8x8xf32>
    %cst_76 = arith.constant dense<0.000000e+00> : vector<8xf32>
    %110 = vector.multi_reduction <add>, %109, %cst_76 [1] : vector<8x8xf32> to vector<8xf32>
    %111 = vector.shape_cast %110 : vector<8xf32> to vector<8x1xf32>
    %112 = tpu.reciprocal %111 {approx = true} : vector<8x1xf32> -> vector<8x1xf32>
    %113 = vector.broadcast %112 : vector<8x1xf32> to vector<8x8xf32>
    %114 = arith.mulf %109, %113 : vector<8x8xf32>
    %115 = arith.truncf %114 : vector<8x8xf32> to vector<8x8xbf16>
    %cst_77 = arith.constant dense<0.000000e+00> : vector<8x8xf32>
    %116 = tpu.matmul %115, %102, %cst_77 {dimension_numbers = #tpu.dot_dimension_numbers<[1], [0], [0], [1], [0, 0, 1, 1], [], []>} : vector<8x8xbf16>, vector<8x8xbf16>, vector<8x8xf32> -> vector<8x8xf32>
    %117 = arith.truncf %116 : vector<8x8xf32> to vector<8x8xbf16>
    %118 = vector.extract_strided_slice %17 {offsets = [8, 0], sizes = [8, 32], strides = [1, 1]} : vector<32x32xbf16> to vector<8x32xbf16>
    %cst_78 = arith.constant dense<0.000000e+00> : vector<8x32xf32>
    %119 = tpu.matmul %117, %118, %cst_78 {dimension_numbers = #tpu.dot_dimension_numbers<[1], [0], [0], [1], [0, 0, 1, 1], [], []>} : vector<8x8xbf16>, vector<8x32xbf16>, vector<8x32xf32> -> vector<8x32xf32>
    %120 = arith.addf %96, %119 : vector<8x32xf32>
    %121 = vector.extract_strided_slice %73 {offsets = [0, 16], sizes = [8, 8], strides = [1, 1]} : vector<8x32xf32> to vector<8x8xf32>
    %122 = arith.truncf %121 : vector<8x8xf32> to vector<8x8xbf16>
    %123 = vector.extract_strided_slice %68 {offsets = [0, 16], sizes = [8, 8], strides = [1, 1]} : vector<8x32xf32> to vector<8x8xf32>
    %124 = arith.truncf %123 : vector<8x8xf32> to vector<8x8xbf16>
    %125 = vector.extract_strided_slice %71 {offsets = [0, 16], sizes = [8, 8], strides = [1, 1]} : vector<8x32xf32> to vector<8x8xf32>
    %126 = arith.truncf %125 : vector<8x8xf32> to vector<8x8xbf16>
    "tpu.trace_start"() <{level = 10 : i32, message = "qd,kd->qk"}> : () -> ()
    %cst_79 = arith.constant dense<0.000000e+00> : vector<8x8xf32>
    %127 = tpu.matmul %122, %124, %cst_79 {dimension_numbers = #tpu.dot_dimension_numbers<[1], [1], [0], [0], [0, 0, 1, 0], [], []>} : vector<8x8xbf16>, vector<8x8xbf16>, vector<8x8xf32> -> vector<8x8xf32>
    "tpu.trace_stop"() : () -> ()
    %128 = arith.addf %127, %37 : vector<8x8xf32>
    %cst_80 = arith.constant dense<0xFF800000> : vector<8xf32>
    %129 = vector.multi_reduction <maximumf>, %128, %cst_80 [1] : vector<8x8xf32> to vector<8xf32>
    %130 = vector.shape_cast %129 : vector<8xf32> to vector<8x1xf32>
    %131 = vector.broadcast %130 : vector<8x1xf32> to vector<8x8xf32>
    %132 = arith.subf %128, %131 : vector<8x8xf32>
    %133 = math.exp %132 : vector<8x8xf32>
    %cst_81 = arith.constant dense<0.000000e+00> : vector<8xf32>
    %134 = vector.multi_reduction <add>, %133, %cst_81 [1] : vector<8x8xf32> to vector<8xf32>
    %135 = vector.shape_cast %134 : vector<8xf32> to vector<8x1xf32>
    %136 = tpu.reciprocal %135 {approx = true} : vector<8x1xf32> -> vector<8x1xf32>
    %137 = vector.broadcast %136 : vector<8x1xf32> to vector<8x8xf32>
    %138 = arith.mulf %133, %137 : vector<8x8xf32>
    %139 = arith.truncf %138 : vector<8x8xf32> to vector<8x8xbf16>
    %cst_82 = arith.constant dense<0.000000e+00> : vector<8x8xf32>
    %140 = tpu.matmul %139, %126, %cst_82 {dimension_numbers = #tpu.dot_dimension_numbers<[1], [0], [0], [1], [0, 0, 1, 1], [], []>} : vector<8x8xbf16>, vector<8x8xbf16>, vector<8x8xf32> -> vector<8x8xf32>
    %141 = arith.truncf %140 : vector<8x8xf32> to vector<8x8xbf16>
    %142 = vector.extract_strided_slice %17 {offsets = [16, 0], sizes = [8, 32], strides = [1, 1]} : vector<32x32xbf16> to vector<8x32xbf16>
    %cst_83 = arith.constant dense<0.000000e+00> : vector<8x32xf32>
    %143 = tpu.matmul %141, %142, %cst_83 {dimension_numbers = #tpu.dot_dimension_numbers<[1], [0], [0], [1], [0, 0, 1, 1], [], []>} : vector<8x8xbf16>, vector<8x32xbf16>, vector<8x32xf32> -> vector<8x32xf32>
    %144 = arith.addf %120, %143 : vector<8x32xf32>
    %145 = vector.extract_strided_slice %73 {offsets = [0, 24], sizes = [8, 8], strides = [1, 1]} : vector<8x32xf32> to vector<8x8xf32>
    %146 = arith.truncf %145 : vector<8x8xf32> to vector<8x8xbf16>
    %147 = vector.extract_strided_slice %68 {offsets = [0, 24], sizes = [8, 8], strides = [1, 1]} : vector<8x32xf32> to vector<8x8xf32>
    %148 = arith.truncf %147 : vector<8x8xf32> to vector<8x8xbf16>
    %149 = vector.extract_strided_slice %71 {offsets = [0, 24], sizes = [8, 8], strides = [1, 1]} : vector<8x32xf32> to vector<8x8xf32>
    %150 = arith.truncf %149 : vector<8x8xf32> to vector<8x8xbf16>
    "tpu.trace_start"() <{level = 10 : i32, message = "qd,kd->qk"}> : () -> ()
    %cst_84 = arith.constant dense<0.000000e+00> : vector<8x8xf32>
    %151 = tpu.matmul %146, %148, %cst_84 {dimension_numbers = #tpu.dot_dimension_numbers<[1], [1], [0], [0], [0, 0, 1, 0], [], []>} : vector<8x8xbf16>, vector<8x8xbf16>, vector<8x8xf32> -> vector<8x8xf32>
    "tpu.trace_stop"() : () -> ()
    %152 = arith.addf %151, %37 : vector<8x8xf32>
    %cst_85 = arith.constant dense<0xFF800000> : vector<8xf32>
    %153 = vector.multi_reduction <maximumf>, %152, %cst_85 [1] : vector<8x8xf32> to vector<8xf32>
    %154 = vector.shape_cast %153 : vector<8xf32> to vector<8x1xf32>
    %155 = vector.broadcast %154 : vector<8x1xf32> to vector<8x8xf32>
    %156 = arith.subf %152, %155 : vector<8x8xf32>
    %157 = math.exp %156 : vector<8x8xf32>
    %cst_86 = arith.constant dense<0.000000e+00> : vector<8xf32>
    %158 = vector.multi_reduction <add>, %157, %cst_86 [1] : vector<8x8xf32> to vector<8xf32>
    %159 = vector.shape_cast %158 : vector<8xf32> to vector<8x1xf32>
    %160 = tpu.reciprocal %159 {approx = true} : vector<8x1xf32> -> vector<8x1xf32>
    %161 = vector.broadcast %160 : vector<8x1xf32> to vector<8x8xf32>
    %162 = arith.mulf %157, %161 : vector<8x8xf32>
    %163 = arith.truncf %162 : vector<8x8xf32> to vector<8x8xbf16>
    %cst_87 = arith.constant dense<0.000000e+00> : vector<8x8xf32>
    %164 = tpu.matmul %163, %150, %cst_87 {dimension_numbers = #tpu.dot_dimension_numbers<[1], [0], [0], [1], [0, 0, 1, 1], [], []>} : vector<8x8xbf16>, vector<8x8xbf16>, vector<8x8xf32> -> vector<8x8xf32>
    %165 = arith.truncf %164 : vector<8x8xf32> to vector<8x8xbf16>
    %166 = vector.extract_strided_slice %17 {offsets = [24, 0], sizes = [8, 32], strides = [1, 1]} : vector<32x32xbf16> to vector<8x32xbf16>
    %cst_88 = arith.constant dense<0.000000e+00> : vector<8x32xf32>
    %167 = tpu.matmul %165, %166, %cst_88 {dimension_numbers = #tpu.dot_dimension_numbers<[1], [0], [0], [1], [0, 0, 1, 1], [], []>} : vector<8x8xbf16>, vector<8x32xbf16>, vector<8x32xf32> -> vector<8x32xf32>
    %168 = arith.addf %144, %167 : vector<8x32xf32>
    %169 = vector.broadcast %18 : vector<1x32xf32> to vector<8x32xf32>
    %170 = arith.addf %168, %169 : vector<8x32xf32>
    %171 = arith.addf %1, %170 : vector<8x32xf32>
    %c0_89 = arith.constant 0 : index
    %c0_90 = arith.constant 0 : index
    %172 = vector.load %arg7[%c0_89, %c0_90] : memref<1x32xf32, #tpu.memory_space<vmem>>, vector<1x32xf32>
    %c0_91 = arith.constant 0 : index
    %c0_92 = arith.constant 0 : index
    %173 = vector.load %arg8[%c0_91, %c0_92] : memref<1x32xf32, #tpu.memory_space<vmem>>, vector<1x32xf32>
    %cst_93 = arith.constant dense<0.000000e+00> : vector<8xf32>
    %174 = vector.multi_reduction <add>, %171, %cst_93 [1] : vector<8x32xf32> to vector<8xf32>
    %175 = vector.shape_cast %174 : vector<8xf32> to vector<8x1xf32>
    %cst_94 = arith.constant 3.200000e+01 : f32
    %176 = vector.broadcast %cst_94 : f32 to vector<8x1xf32>
    %177 = arith.divf %175, %176 : vector<8x1xf32>
    %178 = vector.broadcast %177 : vector<8x1xf32> to vector<8x32xf32>
    %179 = arith.subf %171, %178 : vector<8x32xf32>
    %180 = arith.mulf %179, %179 : vector<8x32xf32>
    %cst_95 = arith.constant dense<0.000000e+00> : vector<8xf32>
    %181 = vector.multi_reduction <add>, %180, %cst_95 [1] : vector<8x32xf32> to vector<8xf32>
    %182 = vector.shape_cast %181 : vector<8xf32> to vector<8x1xf32>
    %cst_96 = arith.constant 3.200000e+01 : f32
    %183 = vector.broadcast %cst_96 : f32 to vector<8x1xf32>
    %184 = arith.divf %182, %183 : vector<8x1xf32>
    %185 = vector.broadcast %177 : vector<8x1xf32> to vector<8x32xf32>
    %186 = arith.subf %171, %185 : vector<8x32xf32>
    %cst_97 = arith.constant 9.99999997E-7 : f32
    %187 = vector.broadcast %cst_97 : f32 to vector<8x1xf32>
    %188 = arith.addf %184, %187 : vector<8x1xf32>
    %189 = math.rsqrt %188 : vector<8x1xf32>
    %190 = vector.broadcast %189 : vector<8x1xf32> to vector<8x32xf32>
    %191 = arith.mulf %186, %190 : vector<8x32xf32>
    %192 = vector.broadcast %172 : vector<1x32xf32> to vector<8x32xf32>
    %193 = arith.mulf %191, %192 : vector<8x32xf32>
    %194 = vector.broadcast %173 : vector<1x32xf32> to vector<8x32xf32>
    %195 = arith.addf %193, %194 : vector<8x32xf32>
    %196 = arith.truncf %195 : vector<8x32xf32> to vector<8x32xbf16>
    %cst_98 = arith.constant dense<0.000000e+00> : vector<8x32xf32>
    %197 = tpu.matmul %196, %19, %cst_98 {dimension_numbers = #tpu.dot_dimension_numbers<[1], [0], [0], [1], [0, 0, 1, 1], [], []>} : vector<8x32xbf16>, vector<32x32xbf16>, vector<8x32xf32> -> vector<8x32xf32>
    %198 = vector.broadcast %20 : vector<1x32xf32> to vector<8x32xf32>
    %199 = arith.addf %197, %198 : vector<8x32xf32>
    %cst_99 = arith.constant dense<0.000000e+00> : vector<8x32xf32>
    %200 = tpu.matmul %3, %21, %cst_99 {dimension_numbers = #tpu.dot_dimension_numbers<[1], [0], [0], [1], [0, 0, 1, 1], [], []>} : vector<8x32xbf16>, vector<32x32xbf16>, vector<8x32xf32> -> vector<8x32xf32>
    %201 = vector.broadcast %22 : vector<1x32xf32> to vector<8x32xf32>
    %202 = arith.addf %200, %201 : vector<8x32xf32>
    %cst_100 = arith.constant dense<0.000000e+00> : vector<8x32xf32>
    %203 = tpu.matmul %3, %23, %cst_100 {dimension_numbers = #tpu.dot_dimension_numbers<[1], [0], [0], [1], [0, 0, 1, 1], [], []>} : vector<8x32xbf16>, vector<32x32xbf16>, vector<8x32xf32> -> vector<8x32xf32>
    %204 = vector.broadcast %24 : vector<1x32xf32> to vector<8x32xf32>
    %205 = arith.addf %203, %204 : vector<8x32xf32>
    %cst_101 = arith.constant 0.353553385 : f32
    %206 = vector.broadcast %cst_101 : f32 to vector<8x32xf32>
    %207 = arith.mulf %199, %206 : vector<8x32xf32>
    %208 = vector.extract_strided_slice %207 {offsets = [0, 0], sizes = [8, 8], strides = [1, 1]} : vector<8x32xf32> to vector<8x8xf32>
    %209 = arith.truncf %208 : vector<8x8xf32> to vector<8x8xbf16>
    %210 = vector.extract_strided_slice %202 {offsets = [0, 0], sizes = [8, 8], strides = [1, 1]} : vector<8x32xf32> to vector<8x8xf32>
    %211 = arith.truncf %210 : vector<8x8xf32> to vector<8x8xbf16>
    %212 = vector.extract_strided_slice %205 {offsets = [0, 0], sizes = [8, 8], strides = [1, 1]} : vector<8x32xf32> to vector<8x8xf32>
    %213 = arith.truncf %212 : vector<8x8xf32> to vector<8x8xbf16>
    "tpu.trace_start"() <{level = 10 : i32, message = "qd,kd->qk"}> : () -> ()
    %cst_102 = arith.constant dense<0.000000e+00> : vector<8x8xf32>
    %214 = tpu.matmul %209, %211, %cst_102 {dimension_numbers = #tpu.dot_dimension_numbers<[1], [1], [0], [0], [0, 0, 1, 0], [], []>} : vector<8x8xbf16>, vector<8x8xbf16>, vector<8x8xf32> -> vector<8x8xf32>
    "tpu.trace_stop"() : () -> ()
    %215 = arith.addf %214, %10 : vector<8x8xf32>
    %cst_103 = arith.constant dense<0xFF800000> : vector<8xf32>
    %216 = vector.multi_reduction <maximumf>, %215, %cst_103 [1] : vector<8x8xf32> to vector<8xf32>
    %217 = vector.shape_cast %216 : vector<8xf32> to vector<8x1xf32>
    %218 = vector.broadcast %217 : vector<8x1xf32> to vector<8x8xf32>
    %219 = arith.subf %215, %218 : vector<8x8xf32>
    %220 = math.exp %219 : vector<8x8xf32>
    %cst_104 = arith.constant dense<0.000000e+00> : vector<8xf32>
    %221 = vector.multi_reduction <add>, %220, %cst_104 [1] : vector<8x8xf32> to vector<8xf32>
    %222 = vector.shape_cast %221 : vector<8xf32> to vector<8x1xf32>
    %223 = tpu.reciprocal %222 {approx = true} : vector<8x1xf32> -> vector<8x1xf32>
    %224 = vector.broadcast %223 : vector<8x1xf32> to vector<8x8xf32>
    %225 = arith.mulf %220, %224 : vector<8x8xf32>
    %226 = arith.truncf %225 : vector<8x8xf32> to vector<8x8xbf16>
    %cst_105 = arith.constant dense<0.000000e+00> : vector<8x8xf32>
    %227 = tpu.matmul %226, %213, %cst_105 {dimension_numbers = #tpu.dot_dimension_numbers<[1], [0], [0], [1], [0, 0, 1, 1], [], []>} : vector<8x8xbf16>, vector<8x8xbf16>, vector<8x8xf32> -> vector<8x8xf32>
    %228 = arith.truncf %227 : vector<8x8xf32> to vector<8x8xbf16>
    %229 = vector.extract_strided_slice %25 {offsets = [0, 0], sizes = [8, 32], strides = [1, 1]} : vector<32x32xbf16> to vector<8x32xbf16>
    %cst_106 = arith.constant dense<0.000000e+00> : vector<8x32xf32>
    %230 = tpu.matmul %228, %229, %cst_106 {dimension_numbers = #tpu.dot_dimension_numbers<[1], [0], [0], [1], [0, 0, 1, 1], [], []>} : vector<8x8xbf16>, vector<8x32xbf16>, vector<8x32xf32> -> vector<8x32xf32>
    %231 = vector.extract_strided_slice %207 {offsets = [0, 8], sizes = [8, 8], strides = [1, 1]} : vector<8x32xf32> to vector<8x8xf32>
    %232 = arith.truncf %231 : vector<8x8xf32> to vector<8x8xbf16>
    %233 = vector.extract_strided_slice %202 {offsets = [0, 8], sizes = [8, 8], strides = [1, 1]} : vector<8x32xf32> to vector<8x8xf32>
    %234 = arith.truncf %233 : vector<8x8xf32> to vector<8x8xbf16>
    %235 = vector.extract_strided_slice %205 {offsets = [0, 8], sizes = [8, 8], strides = [1, 1]} : vector<8x32xf32> to vector<8x8xf32>
    %236 = arith.truncf %235 : vector<8x8xf32> to vector<8x8xbf16>
    "tpu.trace_start"() <{level = 10 : i32, message = "qd,kd->qk"}> : () -> ()
    %cst_107 = arith.constant dense<0.000000e+00> : vector<8x8xf32>
    %237 = tpu.matmul %232, %234, %cst_107 {dimension_numbers = #tpu.dot_dimension_numbers<[1], [1], [0], [0], [0, 0, 1, 0], [], []>} : vector<8x8xbf16>, vector<8x8xbf16>, vector<8x8xf32> -> vector<8x8xf32>
    "tpu.trace_stop"() : () -> ()
    %238 = arith.addf %237, %10 : vector<8x8xf32>
    %cst_108 = arith.constant dense<0xFF800000> : vector<8xf32>
    %239 = vector.multi_reduction <maximumf>, %238, %cst_108 [1] : vector<8x8xf32> to vector<8xf32>
    %240 = vector.shape_cast %239 : vector<8xf32> to vector<8x1xf32>
    %241 = vector.broadcast %240 : vector<8x1xf32> to vector<8x8xf32>
    %242 = arith.subf %238, %241 : vector<8x8xf32>
    %243 = math.exp %242 : vector<8x8xf32>
    %cst_109 = arith.constant dense<0.000000e+00> : vector<8xf32>
    %244 = vector.multi_reduction <add>, %243, %cst_109 [1] : vector<8x8xf32> to vector<8xf32>
    %245 = vector.shape_cast %244 : vector<8xf32> to vector<8x1xf32>
    %246 = tpu.reciprocal %245 {approx = true} : vector<8x1xf32> -> vector<8x1xf32>
    %247 = vector.broadcast %246 : vector<8x1xf32> to vector<8x8xf32>
    %248 = arith.mulf %243, %247 : vector<8x8xf32>
    %249 = arith.truncf %248 : vector<8x8xf32> to vector<8x8xbf16>
    %cst_110 = arith.constant dense<0.000000e+00> : vector<8x8xf32>
    %250 = tpu.matmul %249, %236, %cst_110 {dimension_numbers = #tpu.dot_dimension_numbers<[1], [0], [0], [1], [0, 0, 1, 1], [], []>} : vector<8x8xbf16>, vector<8x8xbf16>, vector<8x8xf32> -> vector<8x8xf32>
    %251 = arith.truncf %250 : vector<8x8xf32> to vector<8x8xbf16>
    %252 = vector.extract_strided_slice %25 {offsets = [8, 0], sizes = [8, 32], strides = [1, 1]} : vector<32x32xbf16> to vector<8x32xbf16>
    %cst_111 = arith.constant dense<0.000000e+00> : vector<8x32xf32>
    %253 = tpu.matmul %251, %252, %cst_111 {dimension_numbers = #tpu.dot_dimension_numbers<[1], [0], [0], [1], [0, 0, 1, 1], [], []>} : vector<8x8xbf16>, vector<8x32xbf16>, vector<8x32xf32> -> vector<8x32xf32>
    %254 = arith.addf %230, %253 : vector<8x32xf32>
    %255 = vector.extract_strided_slice %207 {offsets = [0, 16], sizes = [8, 8], strides = [1, 1]} : vector<8x32xf32> to vector<8x8xf32>
    %256 = arith.truncf %255 : vector<8x8xf32> to vector<8x8xbf16>
    %257 = vector.extract_strided_slice %202 {offsets = [0, 16], sizes = [8, 8], strides = [1, 1]} : vector<8x32xf32> to vector<8x8xf32>
    %258 = arith.truncf %257 : vector<8x8xf32> to vector<8x8xbf16>
    %259 = vector.extract_strided_slice %205 {offsets = [0, 16], sizes = [8, 8], strides = [1, 1]} : vector<8x32xf32> to vector<8x8xf32>
    %260 = arith.truncf %259 : vector<8x8xf32> to vector<8x8xbf16>
    "tpu.trace_start"() <{level = 10 : i32, message = "qd,kd->qk"}> : () -> ()
    %cst_112 = arith.constant dense<0.000000e+00> : vector<8x8xf32>
    %261 = tpu.matmul %256, %258, %cst_112 {dimension_numbers = #tpu.dot_dimension_numbers<[1], [1], [0], [0], [0, 0, 1, 0], [], []>} : vector<8x8xbf16>, vector<8x8xbf16>, vector<8x8xf32> -> vector<8x8xf32>
    "tpu.trace_stop"() : () -> ()
    %262 = arith.addf %261, %10 : vector<8x8xf32>
    %cst_113 = arith.constant dense<0xFF800000> : vector<8xf32>
    %263 = vector.multi_reduction <maximumf>, %262, %cst_113 [1] : vector<8x8xf32> to vector<8xf32>
    %264 = vector.shape_cast %263 : vector<8xf32> to vector<8x1xf32>
    %265 = vector.broadcast %264 : vector<8x1xf32> to vector<8x8xf32>
    %266 = arith.subf %262, %265 : vector<8x8xf32>
    %267 = math.exp %266 : vector<8x8xf32>
    %cst_114 = arith.constant dense<0.000000e+00> : vector<8xf32>
    %268 = vector.multi_reduction <add>, %267, %cst_114 [1] : vector<8x8xf32> to vector<8xf32>
    %269 = vector.shape_cast %268 : vector<8xf32> to vector<8x1xf32>
    %270 = tpu.reciprocal %269 {approx = true} : vector<8x1xf32> -> vector<8x1xf32>
    %271 = vector.broadcast %270 : vector<8x1xf32> to vector<8x8xf32>
    %272 = arith.mulf %267, %271 : vector<8x8xf32>
    %273 = arith.truncf %272 : vector<8x8xf32> to vector<8x8xbf16>
    %cst_115 = arith.constant dense<0.000000e+00> : vector<8x8xf32>
    %274 = tpu.matmul %273, %260, %cst_115 {dimension_numbers = #tpu.dot_dimension_numbers<[1], [0], [0], [1], [0, 0, 1, 1], [], []>} : vector<8x8xbf16>, vector<8x8xbf16>, vector<8x8xf32> -> vector<8x8xf32>
    %275 = arith.truncf %274 : vector<8x8xf32> to vector<8x8xbf16>
    %276 = vector.extract_strided_slice %25 {offsets = [16, 0], sizes = [8, 32], strides = [1, 1]} : vector<32x32xbf16> to vector<8x32xbf16>
    %cst_116 = arith.constant dense<0.000000e+00> : vector<8x32xf32>
    %277 = tpu.matmul %275, %276, %cst_116 {dimension_numbers = #tpu.dot_dimension_numbers<[1], [0], [0], [1], [0, 0, 1, 1], [], []>} : vector<8x8xbf16>, vector<8x32xbf16>, vector<8x32xf32> -> vector<8x32xf32>
    %278 = arith.addf %254, %277 : vector<8x32xf32>
    %279 = vector.extract_strided_slice %207 {offsets = [0, 24], sizes = [8, 8], strides = [1, 1]} : vector<8x32xf32> to vector<8x8xf32>
    %280 = arith.truncf %279 : vector<8x8xf32> to vector<8x8xbf16>
    %281 = vector.extract_strided_slice %202 {offsets = [0, 24], sizes = [8, 8], strides = [1, 1]} : vector<8x32xf32> to vector<8x8xf32>
    %282 = arith.truncf %281 : vector<8x8xf32> to vector<8x8xbf16>
    %283 = vector.extract_strided_slice %205 {offsets = [0, 24], sizes = [8, 8], strides = [1, 1]} : vector<8x32xf32> to vector<8x8xf32>
    %284 = arith.truncf %283 : vector<8x8xf32> to vector<8x8xbf16>
    "tpu.trace_start"() <{level = 10 : i32, message = "qd,kd->qk"}> : () -> ()
    %cst_117 = arith.constant dense<0.000000e+00> : vector<8x8xf32>
    %285 = tpu.matmul %280, %282, %cst_117 {dimension_numbers = #tpu.dot_dimension_numbers<[1], [1], [0], [0], [0, 0, 1, 0], [], []>} : vector<8x8xbf16>, vector<8x8xbf16>, vector<8x8xf32> -> vector<8x8xf32>
    "tpu.trace_stop"() : () -> ()
    %286 = arith.addf %285, %10 : vector<8x8xf32>
    %cst_118 = arith.constant dense<0xFF800000> : vector<8xf32>
    %287 = vector.multi_reduction <maximumf>, %286, %cst_118 [1] : vector<8x8xf32> to vector<8xf32>
    %288 = vector.shape_cast %287 : vector<8xf32> to vector<8x1xf32>
    %289 = vector.broadcast %288 : vector<8x1xf32> to vector<8x8xf32>
    %290 = arith.subf %286, %289 : vector<8x8xf32>
    %291 = math.exp %290 : vector<8x8xf32>
    %cst_119 = arith.constant dense<0.000000e+00> : vector<8xf32>
    %292 = vector.multi_reduction <add>, %291, %cst_119 [1] : vector<8x8xf32> to vector<8xf32>
    %293 = vector.shape_cast %292 : vector<8xf32> to vector<8x1xf32>
    %294 = tpu.reciprocal %293 {approx = true} : vector<8x1xf32> -> vector<8x1xf32>
    %295 = vector.broadcast %294 : vector<8x1xf32> to vector<8x8xf32>
    %296 = arith.mulf %291, %295 : vector<8x8xf32>
    %297 = arith.truncf %296 : vector<8x8xf32> to vector<8x8xbf16>
    %cst_120 = arith.constant dense<0.000000e+00> : vector<8x8xf32>
    %298 = tpu.matmul %297, %284, %cst_120 {dimension_numbers = #tpu.dot_dimension_numbers<[1], [0], [0], [1], [0, 0, 1, 1], [], []>} : vector<8x8xbf16>, vector<8x8xbf16>, vector<8x8xf32> -> vector<8x8xf32>
    %299 = arith.truncf %298 : vector<8x8xf32> to vector<8x8xbf16>
    %300 = vector.extract_strided_slice %25 {offsets = [24, 0], sizes = [8, 32], strides = [1, 1]} : vector<32x32xbf16> to vector<8x32xbf16>
    %cst_121 = arith.constant dense<0.000000e+00> : vector<8x32xf32>
    %301 = tpu.matmul %299, %300, %cst_121 {dimension_numbers = #tpu.dot_dimension_numbers<[1], [0], [0], [1], [0, 0, 1, 1], [], []>} : vector<8x8xbf16>, vector<8x32xbf16>, vector<8x32xf32> -> vector<8x32xf32>
    %302 = arith.addf %278, %301 : vector<8x32xf32>
    %303 = vector.broadcast %26 : vector<1x32xf32> to vector<8x32xf32>
    %304 = arith.addf %302, %303 : vector<8x32xf32>
    %305 = arith.addf %171, %304 : vector<8x32xf32>
    %c0_122 = arith.constant 0 : index
    %c0_123 = arith.constant 0 : index
    %306 = vector.load %arg9[%c0_122, %c0_123] : memref<1x32xf32, #tpu.memory_space<vmem>>, vector<1x32xf32>
    %c0_124 = arith.constant 0 : index
    %c0_125 = arith.constant 0 : index
    %307 = vector.load %arg10[%c0_124, %c0_125] : memref<1x32xf32, #tpu.memory_space<vmem>>, vector<1x32xf32>
    %cst_126 = arith.constant dense<0.000000e+00> : vector<8xf32>
    %308 = vector.multi_reduction <add>, %305, %cst_126 [1] : vector<8x32xf32> to vector<8xf32>
    %309 = vector.shape_cast %308 : vector<8xf32> to vector<8x1xf32>
    %cst_127 = arith.constant 3.200000e+01 : f32
    %310 = vector.broadcast %cst_127 : f32 to vector<8x1xf32>
    %311 = arith.divf %309, %310 : vector<8x1xf32>
    %312 = vector.broadcast %311 : vector<8x1xf32> to vector<8x32xf32>
    %313 = arith.subf %305, %312 : vector<8x32xf32>
    %314 = arith.mulf %313, %313 : vector<8x32xf32>
    %cst_128 = arith.constant dense<0.000000e+00> : vector<8xf32>
    %315 = vector.multi_reduction <add>, %314, %cst_128 [1] : vector<8x32xf32> to vector<8xf32>
    %316 = vector.shape_cast %315 : vector<8xf32> to vector<8x1xf32>
    %cst_129 = arith.constant 3.200000e+01 : f32
    %317 = vector.broadcast %cst_129 : f32 to vector<8x1xf32>
    %318 = arith.divf %316, %317 : vector<8x1xf32>
    %319 = vector.broadcast %311 : vector<8x1xf32> to vector<8x32xf32>
    %320 = arith.subf %305, %319 : vector<8x32xf32>
    %cst_130 = arith.constant 9.99999997E-7 : f32
    %321 = vector.broadcast %cst_130 : f32 to vector<8x1xf32>
    %322 = arith.addf %318, %321 : vector<8x1xf32>
    %323 = math.rsqrt %322 : vector<8x1xf32>
    %324 = vector.broadcast %323 : vector<8x1xf32> to vector<8x32xf32>
    %325 = arith.mulf %320, %324 : vector<8x32xf32>
    %326 = vector.broadcast %306 : vector<1x32xf32> to vector<8x32xf32>
    %327 = arith.mulf %325, %326 : vector<8x32xf32>
    %328 = vector.broadcast %307 : vector<1x32xf32> to vector<8x32xf32>
    %329 = arith.addf %327, %328 : vector<8x32xf32>
    %330 = arith.truncf %329 : vector<8x32xf32> to vector<8x32xbf16>
    %cst_131 = arith.constant dense<0.000000e+00> : vector<8x64xf32>
    %331 = tpu.matmul %330, %27, %cst_131 {dimension_numbers = #tpu.dot_dimension_numbers<[1], [0], [0], [1], [0, 0, 1, 1], [], []>} : vector<8x32xbf16>, vector<32x64xbf16>, vector<8x64xf32> -> vector<8x64xf32>
    %332 = vector.broadcast %28 : vector<1x64xf32> to vector<8x64xf32>
    %333 = arith.addf %331, %332 : vector<8x64xf32>
    %cst_132 = arith.constant 0.000000e+00 : f32
    %334 = vector.broadcast %cst_132 : f32 to vector<8x64xf32>
    %335 = arith.maximumf %333, %334 : vector<8x64xf32>
    %336 = arith.truncf %335 : vector<8x64xf32> to vector<8x64xbf16>
    %cst_133 = arith.constant dense<0.000000e+00> : vector<8x32xf32>
    %337 = tpu.matmul %336, %29, %cst_133 {dimension_numbers = #tpu.dot_dimension_numbers<[1], [0], [0], [1], [0, 0, 1, 1], [], []>} : vector<8x64xbf16>, vector<64x32xbf16>, vector<8x32xf32> -> vector<8x32xf32>
    %338 = vector.broadcast %30 : vector<1x32xf32> to vector<8x32xf32>
    %339 = arith.addf %337, %338 : vector<8x32xf32>
    %340 = arith.addf %305, %339 : vector<8x32xf32>
    %c0_134 = arith.constant 0 : index
    %c0_135 = arith.constant 0 : index
    %c0_136 = arith.constant 0 : index
    %341 = vector.load %arg31[%c0_134, %c0_135, %c0_136] : memref<1x8x32xf32, #tpu.memory_space<vmem>>, vector<1x8x32xf32>
    %342 = vector.shape_cast %341 : vector<1x8x32xf32> to vector<8x32xf32>
    %343 = vector.shape_cast %340 : vector<8x32xf32> to vector<1x8x32xf32>
    tpu.vector_store %arg31[%c0_134, %c0_135, %c0_136], %343 {strides = array<i32>} : memref<1x8x32xf32, #tpu.memory_space<vmem>>, vector<1x8x32xf32>,
    return
  }
  func.func @transform_0(%arg0: i32) -> (i32, i32, i32) {
    %c0_i32 = arith.constant 0 : i32
    %c0_i32_0 = arith.constant 0 : i32
    %c0_i32_1 = arith.constant 0 : i32
    return %arg0, %c0_i32, %c0_i32_0 : i32, i32, i32
  }
  func.func @transform_1(%arg0: i32) -> (i32, i32, i32) {
    %c0_i32 = arith.constant 0 : i32
    %c0_i32_0 = arith.constant 0 : i32
    %c0_i32_1 = arith.constant 0 : i32
    return %arg0, %c0_i32, %c0_i32_0 : i32, i32, i32
  }
  func.func @transform_2(%arg0: i32) -> (i32, i32, i32) {
    %c0_i32 = arith.constant 0 : i32
    %c0_i32_0 = arith.constant 0 : i32
    %c0_i32_1 = arith.constant 0 : i32
    return %arg0, %c0_i32, %c0_i32_0 : i32, i32, i32
  }
  func.func @transform_3(%arg0: i32) -> (i32, i32, i32) {
    %c0_i32 = arith.constant 0 : i32
    %c0_i32_0 = arith.constant 0 : i32
    %c0_i32_1 = arith.constant 0 : i32
    return %arg0, %c0_i32, %c0_i32_0 : i32, i32, i32
  }
  func.func @transform_4(%arg0: i32) -> (i32, i32) {
    %c0_i32 = arith.constant 0 : i32
    %c0_i32_0 = arith.constant 0 : i32
    %c0_i32_1 = arith.constant 0 : i32
    return %c0_i32, %c0_i32_0 : i32, i32
  }
  func.func @transform_5(%arg0: i32) -> (i32, i32) {
    %c0_i32 = arith.constant 0 : i32
    %c0_i32_0 = arith.constant 0 : i32
    %c0_i32_1 = arith.constant 0 : i32
    return %c0_i32, %c0_i32_0 : i32, i32
  }
  func.func @transform_6(%arg0: i32) -> (i32, i32) {
    %c0_i32 = arith.constant 0 : i32
    %c0_i32_0 = arith.constant 0 : i32
    %c0_i32_1 = arith.constant 0 : i32
    return %c0_i32, %c0_i32_0 : i32, i32
  }
  func.func @transform_7(%arg0: i32) -> (i32, i32) {
    %c0_i32 = arith.constant 0 : i32
    %c0_i32_0 = arith.constant 0 : i32
    %c0_i32_1 = arith.constant 0 : i32
    return %c0_i32, %c0_i32_0 : i32, i32
  }
  func.func @transform_8(%arg0: i32) -> (i32, i32) {
    %c0_i32 = arith.constant 0 : i32
    %c0_i32_0 = arith.constant 0 : i32
    %c0_i32_1 = arith.constant 0 : i32
    return %c0_i32, %c0_i32_0 : i32, i32
  }
  func.func @transform_9(%arg0: i32) -> (i32, i32) {
    %c0_i32 = arith.constant 0 : i32
    %c0_i32_0 = arith.constant 0 : i32
    %c0_i32_1 = arith.constant 0 : i32
    return %c0_i32, %c0_i32_0 : i32, i32
  }
  func.func @transform_10(%arg0: i32) -> (i32, i32) {
    %c0_i32 = arith.constant 0 : i32
    %c0_i32_0 = arith.constant 0 : i32
    %c0_i32_1 = arith.constant 0 : i32
    return %c0_i32, %c0_i32_0 : i32, i32
  }
  func.func @transform_11(%arg0: i32) -> (i32, i32) {
    %c0_i32 = arith.constant 0 : i32
    %c0_i32_0 = arith.constant 0 : i32
    %c0_i32_1 = arith.constant 0 : i32
    return %c0_i32, %c0_i32_0 : i32, i32
  }
  func.func @transform_12(%arg0: i32) -> (i32, i32) {
    %c0_i32 = arith.constant 0 : i32
    %c0_i32_0 = arith.constant 0 : i32
    %c0_i32_1 = arith.constant 0 : i32
    return %c0_i32, %c0_i32_0 : i32, i32
  }
  func.func @transform_13(%arg0: i32) -> (i32, i32) {
    %c0_i32 = arith.constant 0 : i32
    %c0_i32_0 = arith.constant 0 : i32
    %c0_i32_1 = arith.constant 0 : i32
    return %c0_i32, %c0_i32_0 : i32, i32
  }
  func.func @transform_14(%arg0: i32) -> (i32, i32) {
    %c0_i32 = arith.constant 0 : i32
    %c0_i32_0 = arith.constant 0 : i32
    %c0_i32_1 = arith.constant 0 : i32
    return %c0_i32, %c0_i32_0 : i32, i32
  }
  func.func @transform_15(%arg0: i32) -> (i32, i32) {
    %c0_i32 = arith.constant 0 : i32
    %c0_i32_0 = arith.constant 0 : i32
    %c0_i32_1 = arith.constant 0 : i32
    return %c0_i32, %c0_i32_0 : i32, i32
  }
  func.func @transform_16(%arg0: i32) -> (i32, i32) {
    %c0_i32 = arith.constant 0 : i32
    %c0_i32_0 = arith.constant 0 : i32
    %c0_i32_1 = arith.constant 0 : i32
    return %c0_i32, %c0_i32_0 : i32, i32
  }
  func.func @transform_17(%arg0: i32) -> (i32, i32) {
    %c0_i32 = arith.constant 0 : i32
    %c0_i32_0 = arith.constant 0 : i32
    %c0_i32_1 = arith.constant 0 : i32
    return %c0_i32, %c0_i32_0 : i32, i32
  }
  func.func @transform_18(%arg0: i32) -> (i32, i32) {
    %c0_i32 = arith.constant 0 : i32
    %c0_i32_0 = arith.constant 0 : i32
    %c0_i32_1 = arith.constant 0 : i32
    return %c0_i32, %c0_i32_0 : i32, i32
  }
  func.func @transform_19(%arg0: i32) -> (i32, i32) {
    %c0_i32 = arith.constant 0 : i32
    %c0_i32_0 = arith.constant 0 : i32
    %c0_i32_1 = arith.constant 0 : i32
    return %c0_i32, %c0_i32_0 : i32, i32
  }
  func.func @transform_20(%arg0: i32) -> (i32, i32) {
    %c0_i32 = arith.constant 0 : i32
    %c0_i32_0 = arith.constant 0 : i32
    %c0_i32_1 = arith.constant 0 : i32
    return %c0_i32, %c0_i32_0 : i32, i32
  }
  func.func @transform_21(%arg0: i32) -> (i32, i32) {
    %c0_i32 = arith.constant 0 : i32
    %c0_i32_0 = arith.constant 0 : i32
    %c0_i32_1 = arith.constant 0 : i32
    return %c0_i32, %c0_i32_0 : i32, i32
  }
  func.func @transform_22(%arg0: i32) -> (i32, i32) {
    %c0_i32 = arith.constant 0 : i32
    %c0_i32_0 = arith.constant 0 : i32
    %c0_i32_1 = arith.constant 0 : i32
    return %c0_i32, %c0_i32_0 : i32, i32
  }
  func.func @transform_23(%arg0: i32) -> (i32, i32) {
    %c0_i32 = arith.constant 0 : i32
    %c0_i32_0 = arith.constant 0 : i32
    %c0_i32_1 = arith.constant 0 : i32
    return %c0_i32, %c0_i32_0 : i32, i32
  }
  func.func @transform_24(%arg0: i32) -> (i32, i32) {
    %c0_i32 = arith.constant 0 : i32
    %c0_i32_0 = arith.constant 0 : i32
    %c0_i32_1 = arith.constant 0 : i32
    return %c0_i32, %c0_i32_0 : i32, i32
  }
  func.func @transform_25(%arg0: i32) -> (i32, i32) {
    %c0_i32 = arith.constant 0 : i32
    %c0_i32_0 = arith.constant 0 : i32
    %c0_i32_1 = arith.constant 0 : i32
    return %c0_i32, %c0_i32_0 : i32, i32
  }
  func.func @transform_26(%arg0: i32) -> (i32, i32) {
    %c0_i32 = arith.constant 0 : i32
    %c0_i32_0 = arith.constant 0 : i32
    %c0_i32_1 = arith.constant 0 : i32
    return %c0_i32, %c0_i32_0 : i32, i32
  }
  func.func @transform_27(%arg0: i32) -> (i32, i32) {
    %c0_i32 = arith.constant 0 : i32
    %c0_i32_0 = arith.constant 0 : i32
    %c0_i32_1 = arith.constant 0 : i32
    return %c0_i32, %c0_i32_0 : i32, i32
  }
  func.func @transform_28(%arg0: i32) -> (i32, i32) {
    %c0_i32 = arith.constant 0 : i32
    %c0_i32_0 = arith.constant 0 : i32
    %c0_i32_1 = arith.constant 0 : i32
    return %c0_i32, %c0_i32_0 : i32, i32
  }
  func.func @transform_29(%arg0: i32) -> (i32, i32) {
    %c0_i32 = arith.constant 0 : i32
    %c0_i32_0 = arith.constant 0 : i32
    %c0_i32_1 = arith.constant 0 : i32
    return %c0_i32, %c0_i32_0 : i32, i32
  }
  func.func @transform_30(%arg0: i32) -> (i32, i32, i32) {
    %c0_i32 = arith.constant 0 : i32
    %c0_i32_0 = arith.constant 0 : i32
    %c0_i32_1 = arith.constant 0 : i32
    return %arg0, %c0_i32, %c0_i32_0 : i32, i32, i32
  }
}

</mosaic_0001>

<bundles_post_ra>
// kernel: tpu_custom_call.1
= control target key start
LH: loop header
LB: loop body
LE: loop exit
PB: predicated region body
PF: predicated region fallthrough
CT: control target
= control target key end

     0   :  { %s4716_s6 = smov 1   ;;  %s4717_s10 = smov 2   ;;  %s5630_s0 = inlined_call_operand.smem [shape: u32[31], index: -1, kind: input, shape index: {}] }
   0x1   :  { %s4780_s5 = sld [smem:[%s5630_s0]]   ;;  %s4718_s14 = smov 3  }
   0x2   :  { %s4785_s9 = sld [smem:[%s5630_s0 + %s4716_s6]]   ;;  %s4719_s18 = smov 4  }
   0x3   :  { %s4790_s13 = sld [smem:[%s5630_s0 + %s4717_s10]]   ;;  %s4720_s22 = smov 5  }
   0x4   :  { %s4795_s17 = sld [smem:[%s5630_s0 + %s4718_s14]]   ;;  %s4721_s26 = smov 6  }
   0x5   :  { %s4800_s21 = sld [smem:[%s5630_s0 + %s4719_s18]]   ;;  %s4722_s30 = smov 7  }
   0x6   :  { %s4805_s25 = sld [smem:[%s5630_s0 + %s4720_s22]]   ;;  %s4723_s4 = smov 8  }
   0x7   :  { %5657 = sst [smem:[#allocation40_spill]] %s4780_s5  ;;  %s4724_s10 = smov 9  }
   0x8   :  { %5658 = sst [smem:[#allocation41_spill]] %s4785_s9  ;;  %s4725_s15 = smov 10  }
   0x9   :  { %5659 = sst [smem:[#allocation42_spill]] %s4790_s13  ;;  %s4726_s20 = smov 11  }
   0xa   :  { %5660 = sst [smem:[#allocation43_spill]] %s4795_s17  ;;  %s4728_s1 = smov 13  }
   0xb   :  { %s4810_s29 = sld [smem:[%s5630_s0 + %s4721_s26]]   ;;  %s4727_s26 = smov 12  }
   0xc   :  { %s4815_s3 = sld [smem:[%s5630_s0 + %s4722_s30]]   ;;  %s4729_s7 = smov 14  }
   0xd   :  { %s4820_s8 = sld [smem:[%s5630_s0 + %s4723_s4]]   ;;  %s4731_s22 = smov 16  }
   0xe   :  { %s4825_s14 = sld [smem:[%s5630_s0 + %s4724_s10]]   ;;  %s4732_s28 = smov 17  }
   0xf   :  { %s4830_s19 = sld [smem:[%s5630_s0 + %s4725_s15]]   ;;  %s4730_s15 = smov 15  }
  0x10   :  { %s4835_s24 = sld [smem:[%s5630_s0 + %s4726_s20]]  }
  0x11   :  { %s4840_s30 = sld [smem:[%s5630_s0 + %s4727_s26]]  }
  0x12   :  { %5661 = sst [smem:[#allocation44_spill]] %s4815_s3 }
  0x13   :  { %5662 = sst [smem:[#allocation45_spill]] %s4820_s8 }
  0x14   :  { %5663 = sst [smem:[#allocation46_spill]] %s4825_s14 }
  0x15   :  { %5664 = sst [smem:[#allocation47_spill]] %s4830_s19 }
  0x16   :  { %s4845_s6 = sld [smem:[%s5630_s0 + %s4728_s1]]  }
  0x17   :  { %s4850_s12 = sld [smem:[%s5630_s0 + %s4729_s7]]   ;;  %s4733_s7 = smov 18  }
  0x18   :  { %s4855_s20 = sld [smem:[%s5630_s0 + %s4730_s15]]   ;;  %s4734_s15 = smov 19  }
  0x19   :  { %s4860_s27 = sld [smem:[%s5630_s0 + %s4731_s22]]   ;;  %s4735_s22 = smov 20  }
  0x1a   :  { %s4865_s4 = sld [smem:[%s5630_s0 + %s4732_s28]]   ;;  %s4736_s28 = smov 21  }
  0x1b   :  { %s4870_s13 = sld [smem:[%s5630_s0 + %s4733_s7]]   ;;  %s4737_s7 = smov 22  }
  0x1c   :  { %5665 = sst [smem:[#allocation48_spill]] %s4845_s6 }
  0x1d   :  { %5666 = sst [smem:[#allocation49_spill]] %s4850_s12 }
  0x1e   :  { %s4875_s17 = sld [smem:[%s5630_s0 + %s4734_s15]]   ;;  %s4738_s15 = smov 23  }
  0x1f   :  { %s4880_s12 = sld [smem:[%s5630_s0 + %s4735_s22]]   ;;  %s4739_s22 = smov 24  }
  0x20   :  { %5667 = sst [smem:[#allocation50_spill]] %s4865_s4 }
  0x21   :  { %5668 = sst [smem:[#allocation51_spill]] %s4870_s13 }
  0x22   :  { %s4885_s19 = sld [smem:[%s5630_s0 + %s4736_s28]]   ;;  %s4740_s28 = smov 25  }
  0x23   :  { %s4890_s13 = sld [smem:[%s5630_s0 + %s4737_s7]]   ;;  %s4741_s7 = smov 26  }
  0x24   :  { %5669 = sst [smem:[#allocation52_spill]] %s4875_s17 }
  0x25   :  { %5670 = sst [smem:[#allocation53_spill]] %s4880_s12 }
  0x26   :  { %s4895_s17 = sld [smem:[%s5630_s0 + %s4738_s15]]   ;;  %s4742_s15 = smov 27  }
  0x27   :  { %s4900_s5 = sld [smem:[%s5630_s0 + %s4739_s22]]   ;;  %s4743_s22 = smov 28  }
  0x28   :  { %5671 = sst [smem:[#allocation54_spill]] %s4885_s19 }
  0x29   :  { %5672 = sst [smem:[#allocation55_spill]] %s4890_s13 }
  0x2a   :  { %s4905_s19 = sld [smem:[%s5630_s0 + %s4740_s28]]   ;;  %s4744_s28 = smov 29  }
  0x2b   :  { %s4910_s13 = sld [smem:[%s5630_s0 + %s4741_s7]]   ;;  %s4745_s7 = smov 30  }
  0x2c   :  { %5673 = sst [smem:[#allocation56_spill]] %s4895_s17 }
  0x2d   :  { %5674 = sst [smem:[#allocation57_spill]] %s4900_s5 }
  0x2e   :  { %s4915_s9 = sld [smem:[%s5630_s0 + %s4742_s15]]  }
  0x2f   :  { %s4920_s17 = sld [smem:[%s5630_s0 + %s4743_s22]]  }
  0x30   :  { %5675 = sst [smem:[#allocation58_spill]] %s4905_s19 }
  0x31   :  { %5676 = sst [smem:[#allocation59_spill]] %s4910_s13 }
  0x32   :  { %s4925_s19 = sld [smem:[%s5630_s0 + %s4744_s28]]  }
  0x33   :  { %s4930_s13 = sld [smem:[%s5630_s0 + %s4745_s7]]  }
  0x38   :  { %5677 = sst [smem:[#allocation60_spill]] %s4925_s19 }
  0x39   :  { %5678 = sst [smem:[#allocation61_spill]] %s4930_s13 }
  0x3a   :  { %66 = vsyncpa [#allocation3], 0 }
  0x3b   :  { %68 = vsyncpa [#allocation3 + $0x1], 0 }
  0x3c   :  { %69 = vsyncpa [#allocation6], 0 }
  0x3d   :  { %70 = vsyncpa [#allocation9], 0 }
  0x3e   :  { %71 = vsyncpa [#allocation12], 0 }
  0x3f   :  { %72 = vsyncpa [#allocation15], 0 }
  0x40   :  { %73 = vsyncpa [#allocation18], 0 }
  0x41   :  { %74 = vsyncpa [#allocation21], 0 }
  0x42   :  { %75 = vsyncpa [#allocation24], 0 }
  0x43   :  { %76 = vsyncpa [#allocation27], 0 }
  0x44   :  { %77 = vsyncpa [#allocation4], 0 }
  0x45   :  { %79 = vsyncpa [#allocation4 + $0x1], 0  ;;  %s4932_s15 = smov 0   ;;  %s4934_s16 = smov 0  }
  0x46   :  { %s4936_s18 = smov 0   ;;  %s4938_s0 = smov 0  }
  0x47 LB: > { %s5679_s14 = sld [smem:[#allocation46_spill]]  ;;  %s5680_s12 = sld [smem:[#allocation53_spill]]  ;;  %s4710_s18 = sphi %s4936_s18, %s5734_s18   ;;  %s4706_s16 = sphi %s4934_s16, %s5733_s16   ;;  %s4702_s15 = sphi %s4932_s15, %s5732_s15   ;;  %s4714_s0 = sphi %s4938_s0, %s5735_s0  }
  0x48   : > { %s5681_s5 = sld [smem:[#allocation57_spill]]  ;;  %s5682_s4 = sld [smem:[#allocation50_spill]] }
  0x49   : > { %s5683_s3 = sld [smem:[#allocation44_spill]]  ;;  %s5684_s6 = sld [smem:[#allocation48_spill]] }
  0x4a   : > { %s5685_s8 = sld [smem:[#allocation45_spill]]  ;;  %s4746_s22 = smov [#allocation5]  }
  0x4b   : > { %s779_s23 = sshll.u32 %s4746_s22, 4  ;;  %s4953_s26 = sadd.s32 4294967295, %s4714_s0   ;;  %s4958_s23 = int_to_ptr.vmem [resolvable:$true] %s779_s23 }
  0x4c   : > { %p3439_p0 = scmp.ge.s32.totalorder %s4714_s0, 1  ;;  %p5640_p1 = scmp.eq.s32.totalorder %s4953_s26, 0 }
  0x4d   : > { %p766_p2 = scmp.lt.s32.totalorder %s4714_s0, 3  ;;  %s4747_s1 = smov [#allocation8]  }
  0x4e   : > { %s801_s2 = sshll.u32 %s4747_s1, 4  ;;  %s4748_s7 = smov [#allocation11]   ;;  %s4967_s2 = int_to_ptr.vmem [resolvable:$true] %s801_s2 }
  0x4f   : > { %p4960_p3 = pnand %p3439_p0, %p766_p2  ;;  %s823_s10 = sshll.u32 %s4748_s7, 4  ;;  %s4975_s10 = int_to_ptr.vmem [resolvable:$true] %s823_s10 }
  0x50   : > { %s4749_s22 = smov [#allocation14]   ;;  %s4138_s19 = scalar_lea.hbm %s4800_s21, 16 }
  0x51   : > { %s5686_s28 = scalar_select %p4960_p3, 1, 0 }
  0x52   : > { %p3905_p5 = pneg %p4960_p3  ;;  %s4977_s13 = sshll.u32 %s4749_s22, 4  ;;  %s849_s13 = int_to_ptr.vmem [resolvable:$true] %s4977_s13 }
  0x53   : > { %p4139_p7 = scmp.ne.s32.totalorder %s4800_s21, %s4138_s19  ;;  %p4145_p11 = scmp.lt.u32.totalorder %s4138_s19, %s4800_s21 }
  0x54   : > { %p4971_p6 = pnand %p3905_p5, %p5640_p1 }
  0x56   : > { %p4983_p8 = pneg %p4971_p6 }
  0x58   : > { %p4141_p9 = pnand %p4983_p8, %p4139_p7 }
  0x5a   : > { %p4142_p10 = pneg %p4141_p9 }
  0x5c   : > { %p4147_p12 = pnand %p4145_p11, %p4142_p10 }
  0x5e   : > { %4150 = shalt.err (!%p4147_p12)
}
  0x5f   : > { %s4151_s7 = scalar_lea.vmem %s4958_s23, 16  ;;  %s4158_s22 = scalar_lea.vmem %s4958_s23, 32 }
  0x60   : > { %p4152_p13 = scmp.ne.s32.totalorder %s4958_s23, %s4151_s7  ;;  %p4159_p5 = scmp.lt.s32.totalorder %s4958_s23, %s4958_s23 }
  0x61   : > { %p4160_p4 = scmp.lt.s32.totalorder %s4158_s22, %s4151_s7 }
  0x62   : > { %p4154_p0 = pnand %p4152_p13, %p4983_p8 }
  0x63   : > { %p4161_p1 = por %p4160_p4, %p4159_p5 }
  0x64   : > { %p4155_p2 = pneg %p4154_p0 }
  0x66   : > { %p4162_p7 = pnand %p4161_p1, %p4155_p2 }
  0x68   : > { %4165 = shalt.err (!%p4162_p7)
}
  0x69   : > { %3908 = dma.hbm_to_vmem [thread:$0]  (!%p4971_p6), %s4800_s21, 16, %s4958_s23, [#allocation6]  }
  0x6a   : > { %s4166_s19 = scalar_lea.hbm %s4810_s29, 16 }
  0x6b   : > { %p4167_p9 = scmp.ne.s32.totalorder %s4810_s29, %s4166_s19  ;;  %p4173_p12 = scmp.lt.u32.totalorder %s4166_s19, %s4810_s29 }
  0x6d   : > { %p4169_p10 = pnand %p4167_p9, %p4983_p8 }
  0x6f   : > { %p4170_p11 = pneg %p4169_p10 }
  0x71   : > { %p4175_p13 = pnand %p4173_p12, %p4170_p11 }
  0x73   : > { %4178 = shalt.err (!%p4175_p13)
}
  0x74   : > { %s4179_s7 = scalar_lea.vmem %s4967_s2, 16  ;;  %s4186_s22 = scalar_lea.vmem %s4967_s2, 32 }
  0x75   : > { %p4180_p1 = scmp.ne.s32.totalorder %s4967_s2, %s4179_s7  ;;  %p4187_p2 = scmp.lt.s32.totalorder %s4967_s2, %s4967_s2 }
  0x76   : > { %p4188_p5 = scmp.lt.s32.totalorder %s4186_s22, %s4179_s7 }
  0x77   : > { %p4182_p4 = pnand %p4180_p1, %p4983_p8 }
  0x78   : > { %p4189_p7 = por %p4188_p5, %p4187_p2 }
  0x79   : > { %p4183_p0 = pneg %p4182_p4 }
  0x7b   : > { %p4190_p9 = pnand %p4189_p7, %p4183_p0 }
  0x7d   : > { %4193 = shalt.err (!%p4190_p9)
}
  0x7e   : > { %3914 = dma.hbm_to_vmem [thread:$0]  (!%p4971_p6), %s4810_s29, 16, %s4967_s2, [#allocation9]  }
  0x7f   : > { %s4194_s23 = scalar_lea.hbm %s5685_s8, 16 }
  0x80   : > { %p4195_p10 = scmp.ne.s32.totalorder %s5685_s8, %s4194_s23  ;;  %p4201_p13 = scmp.lt.u32.totalorder %s4194_s23, %s5685_s8 }
  0x82   : > { %p4197_p11 = pnand %p4195_p10, %p4983_p8 }
  0x84   : > { %p4198_p12 = pneg %p4197_p11 }
  0x86   : > { %p4203_p1 = pnand %p4201_p13, %p4198_p12 }
  0x88   : > { %4206 = shalt.err (!%p4203_p1)
}
  0x89   : > { %s4207_s19 = scalar_lea.vmem %s4975_s10, 16  ;;  %s4214_s7 = scalar_lea.vmem %s4975_s10, 32 }
  0x8a   : > { %p4208_p4 = scmp.ne.s32.totalorder %s4975_s10, %s4207_s19  ;;  %p4215_p5 = scmp.lt.s32.totalorder %s4975_s10, %s4975_s10 }
  0x8b   : > { %p4216_p7 = scmp.lt.s32.totalorder %s4214_s7, %s4207_s19 }
  0x8c   : > { %p4210_p0 = pnand %p4208_p4, %p4983_p8 }
  0x8d   : > { %p4217_p9 = por %p4216_p7, %p4215_p5 }
  0x8e   : > { %p4211_p2 = pneg %p4210_p0 }
  0x90   : > { %p4218_p10 = pnand %p4217_p9, %p4211_p2 }
  0x92   : > { %4221 = shalt.err (!%p4218_p10)
}
  0x93   : > { %3920 = dma.hbm_to_vmem [thread:$0]  (!%p4971_p6), %s5685_s8, 16, %s4975_s10, [#allocation12]  }
  0x94   : > { %s4750_s2 = smov [#allocation17]   ;;  %s4222_s23 = scalar_lea.hbm %s4835_s24, 16 }
  0x95   : > { %s872_s22 = sshll.u32 %s4750_s2, 4  ;;  %p4223_p11 = scmp.ne.s32.totalorder %s4835_s24, %s4222_s23  ;;  %s873_s22 = int_to_ptr.vmem [resolvable:$true] %s872_s22 }
  0x96   : > { %p4229_p1 = scmp.lt.u32.totalorder %s4222_s23, %s4835_s24 }
  0x97   : > { %p4225_p12 = pnand %p4223_p11, %p4983_p8 }
  0x99   : > { %p4226_p13 = pneg %p4225_p12 }
  0x9b   : > { %p4231_p4 = pnand %p4229_p1, %p4226_p13 }
  0x9d   : > { %4234 = shalt.err (!%p4231_p4)
}
  0x9e   : > { %s4235_s19 = scalar_lea.vmem %s849_s13, 16  ;;  %s4242_s7 = scalar_lea.vmem %s849_s13, 32 }
  0x9f   : > { %p4236_p0 = scmp.ne.s32.totalorder %s849_s13, %s4235_s19  ;;  %p4243_p7 = scmp.lt.s32.totalorder %s849_s13, %s849_s13 }
  0xa0   : > { %p4244_p9 = scmp.lt.s32.totalorder %s4242_s7, %s4235_s19 }
  0xa1   : > { %p4238_p2 = pnand %p4236_p0, %p4983_p8 }
  0xa2   : > { %p4245_p10 = por %p4244_p9, %p4243_p7 }
  0xa3   : > { %p4239_p5 = pneg %p4238_p2 }
  0xa5   : > { %p4246_p3 = pnand %p4245_p10, %p4239_p5 }
  0xa7   : > { %4249 = shalt.err (!%p4246_p3)
}
  0xa8   : > { %3926 = dma.hbm_to_vmem [thread:$0]  (!%p4971_p6), %s4835_s24, 16, %s849_s13, [#allocation15]  }
  0xa9   : > { %s4250_s10 = scalar_lea.hbm %s5684_s6, 16 }
  0xaa   : > { %p4251_p11 = scmp.ne.s32.totalorder %s5684_s6, %s4250_s10  ;;  %p4257_p1 = scmp.lt.u32.totalorder %s4250_s10, %s5684_s6 }
  0xac   : > { %p4253_p12 = pnand %p4251_p11, %p4983_p8 }
  0xae   : > { %p4254_p13 = pneg %p4253_p12 }
  0xb0   : > { %p4259_p4 = pnand %p4257_p1, %p4254_p13 }
  0xb2   : > { %4262 = shalt.err (!%p4259_p4)
}
  0xb3   : > { %s4263_s2 = scalar_lea.vmem %s873_s22, 16  ;;  %s4270_s23 = scalar_lea.vmem %s873_s22, 32 }
  0xb4   : > { %p4264_p3 = scmp.ne.s32.totalorder %s873_s22, %s4263_s2  ;;  %p4271_p5 = scmp.lt.s32.totalorder %s873_s22, %s873_s22 }
  0xb5   : > { %p4272_p7 = scmp.lt.s32.totalorder %s4270_s23, %s4263_s2 }
  0xb6   : > { %p4266_p0 = pnand %p4264_p3, %p4983_p8 }
  0xb7   : > { %p4273_p9 = por %p4272_p7, %p4271_p5 }
  0xb8   : > { %p4267_p2 = pneg %p4266_p0 }
  0xba   : > { %p4274_p10 = pnand %p4273_p9, %p4267_p2 }
  0xbc   : > { %4277 = shalt.err (!%p4274_p10)
}
  0xbd   : > { %3932 = dma.hbm_to_vmem [thread:$0]  (!%p4971_p6), %s5684_s6, 16, %s873_s22, [#allocation18]  }
  0xbe   : > { %s4751_s13 = smov [#allocation20]   ;;  %s4752_s7 = smov [#allocation23]  }
  0xbf   : > { %s896_s19 = sshll.u32 %s4751_s13, 4  ;;  %s926_s10 = sshll.u32 %s4752_s7, 4  ;;  %s897_s19 = int_to_ptr.vmem [resolvable:$true] %s896_s19  ;;  %s927_s10 = int_to_ptr.vmem [resolvable:$true] %s926_s10 }
  0xc0   : > { %s4278_s8 = scalar_lea.hbm %s4860_s27, 256 }
  0xc1   : > { %p4279_p11 = scmp.ne.s32.totalorder %s4860_s27, %s4278_s8  ;;  %p4285_p1 = scmp.lt.u32.totalorder %s4278_s8, %s4860_s27 }
  0xc3   : > { %p4281_p12 = pnand %p4279_p11, %p4983_p8 }
  0xc5   : > { %p4282_p13 = pneg %p4281_p12 }
  0xc7   : > { %p4287_p4 = pnand %p4285_p1, %p4282_p13 }
  0xc9   : > { %4290 = shalt.err (!%p4287_p4)
}
  0xca   : > { %s4291_s2 = scalar_lea.vmem %s897_s19, 256  ;;  %p4299_p5 = scmp.lt.s32.totalorder %s897_s19, %s897_s19 }
  0xcb   : > { %p4292_p3 = scmp.ne.s32.totalorder %s897_s19, %s4291_s2  ;;  %p4300_p7 = scmp.lt.s32.totalorder %s4291_s2, %s4291_s2 }
  0xcd   : > { %p4294_p0 = pnand %p4292_p3, %p4983_p8  ;;  %p4301_p9 = por %p4300_p7, %p4299_p5 }
  0xcf   : > { %p4295_p2 = pneg %p4294_p0 }
  0xd1   : > { %p4302_p10 = pnand %p4301_p9, %p4295_p2 }
  0xd3   : > { %4305 = shalt.err (!%p4302_p10)
}
  0xd4   : > { %s5644_s22 = smov 64   ;;  %s4754_s8 = smov 4  }
  0xd5   : > { %3938 = dma.hbm_to_vmem [thread:$0]  (!%p4971_p6), %s4860_s27, 256, %s897_s19, [#allocation21], %s5644_s22, %s5644_s22, %s4754_s8  }
  0xd6   : > { %s4306_s23 = scalar_lea.hbm %s5680_s12, 256 }
  0xd7   : > { %p4307_p11 = scmp.ne.s32.totalorder %s5680_s12, %s4306_s23  ;;  %p4313_p1 = scmp.lt.u32.totalorder %s4306_s23, %s5680_s12 }
  0xd9   : > { %p4309_p12 = pnand %p4307_p11, %p4983_p8 }
  0xdb   : > { %p4310_p13 = pneg %p4309_p12 }
  0xdd   : > { %p4315_p4 = pnand %p4313_p1, %p4310_p13 }
  0xdf   : > { %4318 = shalt.err (!%p4315_p4)
}
  0xe0   : > { %s4319_s13 = scalar_lea.vmem %s927_s10, 256  ;;  %p4327_p5 = scmp.lt.s32.totalorder %s927_s10, %s927_s10 }
  0xe1   : > { %p4320_p3 = scmp.ne.s32.totalorder %s927_s10, %s4319_s13  ;;  %p4328_p7 = scmp.lt.s32.totalorder %s4319_s13, %s4319_s13 }
  0xe3   : > { %p4322_p0 = pnand %p4320_p3, %p4983_p8  ;;  %p4329_p9 = por %p4328_p7, %p4327_p5 }
  0xe5   : > { %p4323_p2 = pneg %p4322_p0 }
  0xe7   : > { %p4330_p10 = pnand %p4329_p9, %p4323_p2 }
  0xe9   : > { %4333 = shalt.err (!%p4330_p10)
}
  0xea   : > { %3944 = dma.hbm_to_vmem [thread:$0]  (!%p4971_p6), %s5680_s12, 256, %s927_s10, [#allocation24], %s5644_s22, %s5644_s22, %s4754_s8  }
  0xeb   : > { %s4755_s19 = smov [#allocation26]   ;;  %s4756_s2 = smov [#allocation7]  }
  0xec   : > { %s956_s7 = sshll.u32 %s4755_s19, 4  ;;  %s790_s23 = sshll.u32 %s4756_s2, 4  ;;  %s957_s7 = int_to_ptr.vmem [resolvable:$true] %s956_s7  ;;  %s791_s23 = int_to_ptr.vmem [resolvable:$true] %s790_s23 }
  0xed   : > { %s4334_s13 = scalar_lea.hbm %s5681_s5, 256 }
  0xee   : > { %p4335_p11 = scmp.ne.s32.totalorder %s5681_s5, %s4334_s13  ;;  %p4341_p1 = scmp.lt.u32.totalorder %s4334_s13, %s5681_s5 }
  0xf0   : > { %p4337_p12 = pnand %p4335_p11, %p4983_p8 }
  0xf2   : > { %p4338_p13 = pneg %p4337_p12 }
  0xf4   : > { %p4343_p4 = pnand %p4341_p1, %p4338_p13 }
  0xf6   : > { %4346 = shalt.err (!%p4343_p4)
}
  0xf7   : > { %s4347_s6 = scalar_lea.vmem %s957_s7, 256  ;;  %p4355_p5 = scmp.lt.s32.totalorder %s957_s7, %s957_s7 }
  0xf8   : > { %p4348_p3 = scmp.ne.s32.totalorder %s957_s7, %s4347_s6  ;;  %p4356_p7 = scmp.lt.s32.totalorder %s4347_s6, %s4347_s6 }
  0xfa   : > { %p4350_p0 = pnand %p4348_p3, %p4983_p8  ;;  %p4357_p9 = por %p4356_p7, %p4355_p5 }
  0xfc   : > { %p4351_p2 = pneg %p4350_p0 }
  0xfe   : > { %p4358_p10 = pnand %p4357_p9, %p4351_p2 }
 0x100   : > { %4361 = shalt.err (!%p4358_p10)
}
 0x101   : > { %3950 = dma.hbm_to_vmem [thread:$0]  (!%p4971_p6), %s5681_s5, 256, %s957_s7, [#allocation27], %s5644_s22, %s5644_s22, %s4754_s8  }
 0x102   : > { %s4362_s10 = scalar_lea.hbm %s4805_s25, 16 }
 0x103   : > { %p4363_p11 = scmp.ne.s32.totalorder %s4805_s25, %s4362_s10  ;;  %p4369_p1 = scmp.lt.u32.totalorder %s4362_s10, %s4805_s25 }
 0x105   : > { %p4365_p12 = pnand %p4363_p11, %p4983_p8 }
 0x107   : > { %p4366_p13 = pneg %p4365_p12 }
 0x109   : > { %p4371_p4 = pnand %p4369_p1, %p4366_p13 }
 0x10b   : > { %4374 = shalt.err (!%p4371_p4)
}
 0x10c   : > { %s4375_s6 = scalar_lea.vmem %s791_s23, 16  ;;  %s4382_s19 = scalar_lea.vmem %s791_s23, 32 }
 0x10d   : > { %p4376_p3 = scmp.ne.s32.totalorder %s791_s23, %s4375_s6  ;;  %p4383_p5 = scmp.lt.s32.totalorder %s791_s23, %s791_s23 }
 0x10e   : > { %p4384_p7 = scmp.lt.s32.totalorder %s4382_s19, %s4375_s6 }
 0x10f   : > { %p4378_p0 = pnand %p4376_p3, %p4983_p8 }
 0x110   : > { %p4385_p9 = por %p4384_p7, %p4383_p5 }
 0x111   : > { %p4379_p2 = pneg %p4378_p0 }
 0x113   : > { %p4386_p10 = pnand %p4385_p9, %p4379_p2 }
 0x115   : > { %4389 = shalt.err (!%p4386_p10)
}
 0x116   : > { %3911 = dma.hbm_to_vmem [thread:$0]  (!%p4971_p6), %s4805_s25, 16, %s791_s23, [#allocation6]  }
 0x117   : > { %s4757_s7 = smov [#allocation10]   ;;  %s4758_s13 = smov [#allocation13]  }
 0x118   : > { %s812_s2 = sshll.u32 %s4757_s7, 4  ;;  %s834_s10 = sshll.u32 %s4758_s13, 4  ;;  %s813_s2 = int_to_ptr.vmem [resolvable:$true] %s812_s2  ;;  %s835_s10 = int_to_ptr.vmem [resolvable:$true] %s834_s10 }
 0x119   : > { %s4390_s22 = scalar_lea.hbm %s5683_s3, 16 }
 0x11a   : > { %p4391_p11 = scmp.ne.s32.totalorder %s5683_s3, %s4390_s22  ;;  %p4397_p1 = scmp.lt.u32.totalorder %s4390_s22, %s5683_s3 }
 0x11c   : > { %p4393_p12 = pnand %p4391_p11, %p4983_p8 }
 0x11e   : > { %p4394_p13 = pneg %p4393_p12 }
 0x120   : > { %p4399_p4 = pnand %p4397_p1, %p4394_p13 }
 0x122   : > { %4402 = shalt.err (!%p4399_p4)
}
 0x123   : > { %s4403_s6 = scalar_lea.vmem %s813_s2, 16  ;;  %s4410_s23 = scalar_lea.vmem %s813_s2, 32 }
 0x124   : > { %p4404_p3 = scmp.ne.s32.totalorder %s813_s2, %s4403_s6  ;;  %p4411_p5 = scmp.lt.s32.totalorder %s813_s2, %s813_s2 }
 0x125   : > { %p4412_p7 = scmp.lt.s32.totalorder %s4410_s23, %s4403_s6 }
 0x126   : > { %p4406_p0 = pnand %p4404_p3, %p4983_p8 }
 0x127   : > { %p4413_p9 = por %p4412_p7, %p4411_p5 }
 0x128   : > { %p4407_p2 = pneg %p4406_p0 }
 0x12a   : > { %p4414_p10 = pnand %p4413_p9, %p4407_p2 }
 0x12c   : > { %4417 = shalt.err (!%p4414_p10)
}
 0x12d   : > { %3917 = dma.hbm_to_vmem [thread:$0]  (!%p4971_p6), %s5683_s3, 16, %s813_s2, [#allocation9]  }
 0x12e   : > { %s4418_s22 = scalar_lea.hbm %s5679_s14, 16 }
 0x12f   : > { %p4419_p11 = scmp.ne.s32.totalorder %s5679_s14, %s4418_s22  ;;  %p4425_p1 = scmp.lt.u32.totalorder %s4418_s22, %s5679_s14 }
 0x131   : > { %p4421_p12 = pnand %p4419_p11, %p4983_p8 }
 0x133   : > { %p4422_p13 = pneg %p4421_p12 }
 0x135   : > { %p4427_p4 = pnand %p4425_p1, %p4422_p13 }
 0x137   : > { %4430 = shalt.err (!%p4427_p4)
}
 0x138   : > { %s4431_s19 = scalar_lea.vmem %s835_s10, 16  ;;  %s4438_s7 = scalar_lea.vmem %s835_s10, 32 }
 0x139   : > { %p4432_p3 = scmp.ne.s32.totalorder %s835_s10, %s4431_s19  ;;  %p4439_p5 = scmp.lt.s32.totalorder %s835_s10, %s835_s10 }
 0x13a   : > { %p4440_p7 = scmp.lt.s32.totalorder %s4438_s7, %s4431_s19 }
 0x13b   : > { %p4434_p0 = pnand %p4432_p3, %p4983_p8 }
 0x13c   : > { %p4441_p9 = por %p4440_p7, %p4439_p5 }
 0x13d   : > { %p4435_p2 = pneg %p4434_p0 }
 0x13f   : > { %p4442_p10 = pnand %p4441_p9, %p4435_p2 }
 0x141   : > { %4445 = shalt.err (!%p4442_p10)
}
 0x142   : > { %3923 = dma.hbm_to_vmem [thread:$0]  (!%p4971_p6), %s5679_s14, 16, %s835_s10, [#allocation12]  }
 0x143   : > { %s4759_s2 = smov [#allocation16]   ;;  %s4760_s6 = smov [#allocation19]  }
 0x144   : > { %s858_s13 = sshll.u32 %s4759_s2, 4  ;;  %s886_s23 = sshll.u32 %s4760_s6, 4  ;;  %s859_s13 = int_to_ptr.vmem [resolvable:$true] %s858_s13  ;;  %s887_s23 = int_to_ptr.vmem [resolvable:$true] %s886_s23 }
 0x145   : > { %s4446_s22 = scalar_lea.hbm %s4840_s30, 256 }
 0x146   : > { %p4447_p11 = scmp.ne.s32.totalorder %s4840_s30, %s4446_s22  ;;  %p4453_p1 = scmp.lt.u32.totalorder %s4446_s22, %s4840_s30 }
 0x148   : > { %p4449_p12 = pnand %p4447_p11, %p4983_p8 }
 0x14a   : > { %p4450_p13 = pneg %p4449_p12 }
 0x14c   : > { %p4455_p4 = pnand %p4453_p1, %p4450_p13 }
 0x14e   : > { %4458 = shalt.err (!%p4455_p4)
}
 0x14f   : > { %s4459_s19 = scalar_lea.vmem %s859_s13, 256  ;;  %p4467_p5 = scmp.lt.s32.totalorder %s859_s13, %s859_s13 }
 0x150   : > { %p4460_p3 = scmp.ne.s32.totalorder %s859_s13, %s4459_s19  ;;  %p4468_p7 = scmp.lt.s32.totalorder %s4459_s19, %s4459_s19 }
 0x152   : > { %p4462_p0 = pnand %p4460_p3, %p4983_p8  ;;  %p4469_p9 = por %p4468_p7, %p4467_p5 }
 0x154   : > { %p4463_p2 = pneg %p4462_p0 }
 0x156   : > { %p4470_p10 = pnand %p4469_p9, %p4463_p2 }
 0x158   : > { %4473 = shalt.err (!%p4470_p10)
}
 0x159   : > { %s5689_s10 = smov 64   ;;  %s4474_s7 = scalar_lea.hbm %s4855_s20, 16 }
 0x15a   : > { %3929 = dma.hbm_to_vmem [thread:$0]  (!%p4971_p6), %s4840_s30, 256, %s859_s13, [#allocation15], %s5689_s10, %s5689_s10, %s4754_s8  }
 0x15b   : > { %p4475_p11 = scmp.ne.s32.totalorder %s4855_s20, %s4474_s7  ;;  %p4481_p1 = scmp.lt.u32.totalorder %s4474_s7, %s4855_s20 }
 0x15d   : > { %p4477_p12 = pnand %p4475_p11, %p4983_p8 }
 0x15f   : > { %p4478_p13 = pneg %p4477_p12 }
 0x161   : > { %p4483_p4 = pnand %p4481_p1, %p4478_p13 }
 0x163   : > { %4486 = shalt.err (!%p4483_p4)
}
 0x164   : > { %s4487_s2 = scalar_lea.vmem %s887_s23, 16  ;;  %s4494_s6 = scalar_lea.vmem %s887_s23, 32 }
 0x165   : > { %p4488_p3 = scmp.ne.s32.totalorder %s887_s23, %s4487_s2  ;;  %p4495_p5 = scmp.lt.s32.totalorder %s887_s23, %s887_s23 }
 0x166   : > { %p4496_p7 = scmp.lt.s32.totalorder %s4494_s6, %s4487_s2 }
 0x167   : > { %p4490_p0 = pnand %p4488_p3, %p4983_p8 }
 0x168   : > { %p4497_p9 = por %p4496_p7, %p4495_p5 }
 0x169   : > { %p4491_p2 = pneg %p4490_p0 }
 0x16b   : > { %p4498_p10 = pnand %p4497_p9, %p4491_p2 }
 0x16d   : > { %4501 = shalt.err (!%p4498_p10)
}
 0x16e   : > { %3935 = dma.hbm_to_vmem [thread:$0]  (!%p4971_p6), %s4855_s20, 16, %s887_s23, [#allocation18]  }
 0x16f   : > { %s4761_s8 = smov [#allocation22]   ;;  %s4762_s22 = smov [#allocation25]  }
 0x170   : > { %s910_s13 = sshll.u32 %s4761_s8, 4  ;;  %s946_s19 = sshll.u32 %s4762_s22, 4  ;;  %s911_s13 = int_to_ptr.vmem [resolvable:$true] %s910_s13  ;;  %s947_s19 = int_to_ptr.vmem [resolvable:$true] %s946_s19 }
 0x171   : > { %s4502_s10 = scalar_lea.hbm %s5682_s4, 16 }
 0x172   : > { %p4503_p11 = scmp.ne.s32.totalorder %s5682_s4, %s4502_s10  ;;  %p4509_p1 = scmp.lt.u32.totalorder %s4502_s10, %s5682_s4 }
 0x174   : > { %p4505_p12 = pnand %p4503_p11, %p4983_p8 }
 0x176   : > { %p4506_p13 = pneg %p4505_p12 }
 0x178   : > { %p4511_p4 = pnand %p4509_p1, %p4506_p13 }
 0x17a   : > { %4514 = shalt.err (!%p4511_p4)
}
 0x17b   : > { %s4515_s7 = scalar_lea.vmem %s911_s13, 16  ;;  %s4522_s23 = scalar_lea.vmem %s911_s13, 32 }
 0x17c   : > { %p4516_p3 = scmp.ne.s32.totalorder %s911_s13, %s4515_s7  ;;  %p4523_p5 = scmp.lt.s32.totalorder %s911_s13, %s911_s13 }
 0x17d   : > { %p4524_p7 = scmp.lt.s32.totalorder %s4522_s23, %s4515_s7 }
 0x17e   : > { %p4518_p0 = pnand %p4516_p3, %p4983_p8 }
 0x17f   : > { %p4525_p9 = por %p4524_p7, %p4523_p5 }
 0x180   : > { %p4519_p2 = pneg %p4518_p0 }
 0x182   : > { %p4526_p10 = pnand %p4525_p9, %p4519_p2 }
 0x184   : > { %4529 = shalt.err (!%p4526_p10)
}
 0x185   : > { %s5690_s2 = sld [smem:[#allocation56_spill]] }
 0x186   : > { %3941 = dma.hbm_to_vmem [thread:$0]  (!%p4971_p6), %s5682_s4, 16, %s911_s13, [#allocation21]  }
 0x18b   : > { %s4530_s6 = scalar_lea.hbm %s5690_s2, 16 }
 0x18c   : > { %p4531_p11 = scmp.ne.s32.totalorder %s5690_s2, %s4530_s6  ;;  %p4537_p1 = scmp.lt.u32.totalorder %s4530_s6, %s5690_s2 }
 0x18e   : > { %p4533_p12 = pnand %p4531_p11, %p4983_p8 }
 0x190   : > { %p4534_p13 = pneg %p4533_p12 }
 0x192   : > { %p4539_p4 = pnand %p4537_p1, %p4534_p13 }
 0x194   : > { %4542 = shalt.err (!%p4539_p4)
}
 0x195   : > { %s4543_s8 = scalar_lea.vmem %s947_s19, 16  ;;  %s4550_s22 = scalar_lea.vmem %s947_s19, 32 }
 0x196   : > { %p4544_p3 = scmp.ne.s32.totalorder %s947_s19, %s4543_s8  ;;  %p4551_p5 = scmp.lt.s32.totalorder %s947_s19, %s947_s19 }
 0x197   : > { %p4552_p7 = scmp.lt.s32.totalorder %s4550_s22, %s4543_s8 }
 0x198   : > { %p4546_p0 = pnand %p4544_p3, %p4983_p8 }
 0x199   : > { %p4553_p9 = por %p4552_p7, %p4551_p5 }
 0x19a   : > { %p4547_p2 = pneg %p4546_p0 }
 0x19c   : > { %p4554_p10 = pnand %p4553_p9, %p4547_p2 }
 0x19e   : > { %4557 = shalt.err (!%p4554_p10)
}
 0x19f   : > { %s5691_s13 = sld [smem:[#allocation58_spill]]  ;;  %s4763_s10 = smov [#allocation28]  }
 0x1a0   : > { %3947 = dma.hbm_to_vmem [thread:$0]  (!%p4971_p6), %s5690_s2, 16, %s947_s19, [#allocation24]  }
 0x1a1   : > { %s970_s7 = sshll.u32 %s4763_s10, 4  ;;  %s971_s7 = int_to_ptr.vmem [resolvable:$true] %s970_s7 }
 0x1a5   : > { %s4558_s23 = scalar_lea.hbm %s5691_s13, 16 }
 0x1a6   : > { %p4559_p11 = scmp.ne.s32.totalorder %s5691_s13, %s4558_s23  ;;  %p4565_p1 = scmp.lt.u32.totalorder %s4558_s23, %s5691_s13 }
 0x1a8   : > { %p4561_p12 = pnand %p4559_p11, %p4983_p8 }
 0x1aa   : > { %p4562_p13 = pneg %p4561_p12 }
 0x1ac   : > { %p4567_p4 = pnand %p4565_p1, %p4562_p13 }
 0x1ae   : > { %4570 = shalt.err (!%p4567_p4)
}
 0x1af   : > { %s4571_s6 = scalar_lea.vmem %s971_s7, 16  ;;  %s4578_s8 = scalar_lea.vmem %s971_s7, 32 }
 0x1b0   : > { %p4572_p3 = scmp.ne.s32.totalorder %s971_s7, %s4571_s6  ;;  %p4579_p5 = scmp.lt.s32.totalorder %s971_s7, %s971_s7 }
 0x1b1   : > { %p4580_p7 = scmp.lt.s32.totalorder %s4578_s8, %s4571_s6 }
 0x1b2   : > { %p4574_p0 = pnand %p4572_p3, %p4983_p8 }
 0x1b3   : > { %p4581_p9 = por %p4580_p7, %p4579_p5 }
 0x1b4   : > { %p4575_p2 = pneg %p4574_p0 }
 0x1b6   : > { %p4582_p10 = pnand %p4581_p9, %p4575_p2 }
 0x1b8   : > { %4585 = shalt.err (!%p4582_p10)
}
 0x1b9   : > { %3953 = dma.hbm_to_vmem [thread:$0]  (!%p4971_p6), %s5691_s13, 16, %s971_s7, [#allocation27]  }
 0x1ba   : > { %s3438_s1 = sadd.s32 4294967294, %s4714_s0   ;;  %s5178_s19 = sadd.s32 1, %s4714_s0  }
 0x1bb   : > { %s115_s11 = ssub.s32 %s4714_s0, %s5178_s19  ;;  %s118_s22 = sadd.s32 1, %s4710_s18 }
 0x1bc   : > { %s5692_s10 = sld [smem:[#allocation41_spill]]  ;;  %p116_p8 = scmp.eq.s32.totalorder %s115_s11, 0 }
 0x1bd   : > { %p125_p11 = scmp.ne.s32.totalorder %s4710_s18, %s4706_s16  ;;  %p126_p12 = scmp.eq.s32.totalorder %s4714_s0, 0 }
 0x1be   : > { %p131_p13 = scmp.ne.s32.totalorder %s4706_s16, %s4702_s15  ;;  %p5694_p4 = scmp.eq.s32.totalorder %s4953_s26, 0 }
 0x1bf   : > { %s5189_s23 = scalar_select %p116_p8, %s4710_s18, %s118_s22  }
 0x1c0   : > { %p5191_p1 = por %p126_p12, %p125_p11  ;;  %p5197_p6 = por %p5694_p4, %p131_p13 }
 0x1c1   : > { %p753_p3 = scmp.eq.s32.totalorder %s4953_s26, 1  ;;  %p759_p0 = scmp.eq.s32.totalorder %s3438_s1, 1 }
 0x1c2   : > { %s5695_s7 = scalar_select %p5197_p6, 1, 0 }
 0x1c3   : > { %p3978_p2 = scmp.lt.s32.totalorder %s4714_s0, 2  ;;  %s1000_s8 = sand.u32 1, %s4710_s18  }
 0x1c4   : > { %p5204_p5 = por %p753_p3, %p125_p11  ;;  %p5208_p7 = por %p759_p0, %p131_p13 }
 0x1c5   : > { %s3457_s2 = sshll.u32 %s1000_s8, 2  ;;  %s3458_s3 = sshll.u32 %s4714_s0, 6 }
 0x1c6   : > { %s5696_s11 = scalar_select %p5204_p5, 1, 0 }
 0x1c7   : > { %s5697_s22 = scalar_select %p5208_p7, 1, 0 }
 0x1c8   : > { %s5214_s4 = scalar_lea.hbm %s5692_s10, %s3458_s3  ;;  %s1004_s1 = scalar_lea.vmem [#allocation2], %s3457_s2 }
 0x1c9   : > { %s1011_s5 = sshll.u32 %s1004_s1, 4  ;;  %p5220_p9 = pnand %p3978_p2, %p5191_p1  ;;  %s5216_s5 = int_to_ptr.vmem [resolvable:$true] %s1011_s5 }
 0x1ca   : > { %s1001_s13 = scalar_lea.sflag [#allocation3], %s1000_s8  ;;  %s4586_s14 = scalar_lea.hbm %s5214_s4, 64 }
 0x1cb   : > { %p4587_p10 = scmp.ne.s32.totalorder %s5214_s4, %s4586_s14  ;;  %p4588_p8 = pneg %p5220_p9 }
 0x1cc   : > { %s4591_s3 = scalar_lea.hbm %s5692_s10, 128  ;;  %p4592_p13 = scmp.lt.u32.totalorder %s5214_s4, %s5692_s10 }
 0x1cd   : > { %p4589_p11 = pnand %p4588_p8, %p4587_p10  ;;  %p4593_p4 = scmp.lt.u32.totalorder %s4591_s3, %s4586_s14 }
 0x1ce   : > { %p4595_p0 = scmp.lt.u32.totalorder %s4586_s14, %s5214_s4 }
 0x1cf   : > { %p4590_p12 = pneg %p4589_p11  ;;  %p4594_p3 = por %p4593_p4, %p4592_p13 }
 0x1d1   : > { %p4596_p1 = por %p4595_p0, %p4594_p3 }
 0x1d3   : > { %p4597_p2 = pnand %p4596_p1, %p4590_p12 }
 0x1d5   : > { %4600 = shalt.err (!%p4597_p2)
}
 0x1d6   : > { %s4601_s2 = scalar_lea.vmem %s5216_s5, 64  ;;  %s4764_s6 = smov [#allocation2]  }
 0x1d7   : > { %p4602_p7 = scmp.ne.s32.totalorder %s5216_s5, %s4601_s2  ;;  %s4606_s8 = sshll.u32 %s4764_s6, 4  ;;  %s4607_s8 = int_to_ptr.vmem [resolvable:$false] %s4606_s8 }
 0x1d8   : > { %s4608_s1 = scalar_lea.vmem %s4607_s8, 128  ;;  %p4609_p10 = scmp.lt.s32.totalorder %s5216_s5, %s4607_s8 }
 0x1d9   : > { %p4604_p5 = pnand %p4602_p7, %p4588_p8  ;;  %p4610_p11 = scmp.lt.s32.totalorder %s4608_s1, %s4601_s2 }
 0x1db   : > { %p4605_p6 = pneg %p4604_p5  ;;  %p4611_p13 = por %p4610_p11, %p4609_p10 }
 0x1dd   : > { %p4612_p4 = pnand %p4611_p13, %p4605_p6 }
 0x1df   : > { %4615 = shalt.err (!%p4612_p4)
}
 0x1e0   : > { %3957 = dma.hbm_to_vmem [thread:$0]  (!%p5220_p9), %s5214_s4, 64, %s5216_s5, %s1001_s13  }
 0x1e1   : > { %p5699_p12 = scmp.ne.s32.totalorder %s5686_s28, 0 }
 0x1e2   : > { %s5248_s14 = sand.u32 (!%p5699_p12), 1, %s4706_s16   ;;  %p5700_p6 = scmp.ne.s32.totalorder (!%p5699_p12), %s5695_s7, 0 }
 0x1e3   : > { %1034 = sbr.rel (%p5699_p12) target bundleno = 7093 (0x1bb5), region = 140  ;;  %s3460_s3 = sshll.u32 (!%p5699_p12), %s5248_s14, 2 }
 0x1e4   : > { %s1037_s6 = scalar_lea.sflag (!%p5699_p12), [#allocation3], %s5248_s14  ;;  %s5252_s2 = scalar_lea.vmem (!%p5699_p12), [#allocation2], %s3460_s3 }
 0x1ea   : > { %4661 = dma.done.wait (%p5700_p6), %s1037_s6, 64  }
 0x1eb   : > { %4663 = vsyncadd (%p5700_p6), %s1037_s6, 4294967232  ;;  %p5701_p5 = scmp.eq.s32.totalorder %s4953_s26, 0 }
 0x1ed   : > { %4665 = dma.done.wait (%p5701_p5), [#allocation6], 32   ;;  %p5702_p7 = pmov %p5701_p5 }
 0x1ee   : > { %p5703_p9 = pmov %p5701_p5 }
 0x1ef   : > { %4667 = vsyncadd (%p5702_p7), [#allocation6], 4294967264 }
 0x1f0   : > { %4669 = dma.done.wait (%p5703_p9), [#allocation9], 32   ;;  %p5704_p8 = pmov %p5701_p5 }
 0x1f1   : > { %p5705_p3 = pmov %p5701_p5 }
 0x1f2   : > { %4671 = vsyncadd (%p5704_p8), [#allocation9], 4294967264 }
 0x1f3   : > { %4673 = dma.done.wait (%p5705_p3), [#allocation12], 32   ;;  %p5706_p0 = pmov %p5705_p3 }
 0x1f5   : > { %4675 = vsyncadd (%p5706_p0), [#allocation12], 4294967264  ;;  %p5707_p1 = pmov %p5706_p0 }
 0x1f6   : > { %p5708_p2 = pmov %p5706_p0 }
 0x1f7   : > { %4677 = dma.done.wait (%p5707_p1), [#allocation15], 272  }
 0x1f8   : > { %4679 = vsyncadd (%p5708_p2), [#allocation15], 4294967024  ;;  %p5709_p10 = pmov %p5706_p0 }
 0x1f9   : > { %p5710_p11 = pmov %p5706_p0 }
 0x1fa   : > { %4681 = dma.done.wait (%p5709_p10), [#allocation18], 32  }
 0x1fb   : > { %4683 = vsyncadd (%p5710_p11), [#allocation18], 4294967264  ;;  %p5711_p13 = pmov %p5706_p0 }
 0x1fc   : > { %p5712_p4 = pmov %p5706_p0 }
 0x1fd   : > { %4685 = dma.done.wait (%p5711_p13), [#allocation21], 272  }
 0x1fe   : > { %4687 = vsyncadd (%p5712_p4), [#allocation21], 4294967024  ;;  %p5713_p12 = pmov %p5706_p0 }
 0x1ff   : > { %p5714_p6 = pmov %p5706_p0 }
 0x200   : > { %4689 = dma.done.wait (%p5713_p12), [#allocation24], 272  }
 0x201   : > { %4691 = vsyncadd (%p5714_p6), [#allocation24], 4294967024  ;;  %p5715_p5 = pmov %p5706_p0 }
 0x202   : > { %p5716_p7 = pmov %p5706_p0 }
 0x203   : > { %4693 = dma.done.wait (%p5715_p5), [#allocation27], 272  }
 0x204   : > { %4695 = vsyncadd (%p5716_p7), [#allocation27], 4294967024  ;;  %s5717_s5 = sld [smem:[#allocation40_spill]]  ;;  %s5718_s12 = sld [smem:[#allocation47_spill]]  ;;  %vm1270_vm0 = vcmask 261120   ;;  %v4083_v8 = vld [vmem:[#allocation16] sm:$0xff]  }
 0x205   : > { %p1193_p9 = scmp.lt.s32.totalorder %s4953_s26, 1  ;;  %v4765_v9 = vmov 0.0   ;;  %v4085_v11 = vld [vmem:[#allocation16 + $0x8] sm:$0xff]   ;;  %vm4766_vm1 = vmmov 0   ;;  %s5719_s7 = sld [smem:[#allocation49_spill]]  ;;  %vm1481_vm2 = vcmask 64512  }
 0x206   : > { %3625 = vmatprep.subr.bf16.mxu0 %v4765_v9  ;;  %3633 = vmatprep.subr.bf16.mxu1 %v4765_v9  ;;  %v3481_v16 = vld [vmem:[#allocation5] ss:$0 sm:$0xff]  ;;  %v3482_v18 = vld [vmem:[#allocation7] ss:$0 sm:$0xff]  ;;  %v3483_v24 = vld [vmem:[#allocation14] ss:$0 sm:$0xff] }
 0x207   : > { %s1194_s4 = scalar_select %p1193_p9, %s4953_s26, 1  ;;  %3634 = vmatpush3.bf16.msra.mxu1 %v4083_v8  ;;  %3629 = vmatprep.mubr.msk.bf16.mxu0 %vm4766_vm1, %v4765_v9  ;;  %v3487_v25 = vld [vmem:[#allocation17] ss:$0 sm:$0xff]  ;;  %v3491_v39 = vld [vmem:[#allocation19] ss:$0 sm:$0xff]  ;;  %vm1543_vm3 = vcmask 1043456  }
 0x208   : > { %3635 = vmatprep.subr.bf16.mxu1 %v4765_v9  ;;  %3637 = vmatprep.mubr.msk.bf16.mxu1 %vm4766_vm1, %v4765_v9  ;;  %s4767_s8 = smov 120   ;;  %s5720_s1 = sld [smem:[#allocation43_spill]]  ;;  %v4768_v52 = vmov -1e+09   ;;  %vm3090_vm6 = vcmask 523264  }
 0x209   : > { %s5292_s28 = sshll.u32 %s1194_s4, 3  ;;  %s4769_s6 = smov 112  }
 0x20a   : > { %s1196_s13 = scalar_lea.vmem %s5717_s5, %s5292_s28  ;;  %v4082_v7 = vld [vmem:[%s5718_s12] sm:$0xff]   ;;  %v4084_v10 = vld [vmem:[%s5718_s12 + $0x8] sm:$0xff]   ;;  %s4770_s5 = smov 104  }
 0x20b   : > { %v5296_v0 = vld [vmem:[%s1196_s13] sm:$0xff]  ;;  %3626 = vmatpush3.bf16.msra.mxu0 %v4082_v7  ;;  %3636 = vmatpush3.bf16.msra.mxu1 %v4085_v11  ;;  %v4087_v23 = vld [vmem:[%s5719_s7 + $0x8] sm:$0xff]   ;;  %s5721_s4 = sld [smem:[#allocation51_spill]]  ;;  %s5722_s13 = sld [smem:[#allocation54_spill]] }
 0x20c   : > { %v1271_v1 = vsel %vm1270_vm0, %v5296_v0, 0.0  ;;  %3627 = vmatprep.subr.bf16.mxu0 %v4765_v9  ;;  %3649 = vmatprep.subr.bf16.mxu1 %v4765_v9  ;;  %v4086_v21 = vld [vmem:[%s5719_s7] sm:$0xff]   ;;  %p5729_p3 = scmp.ne.s32.totalorder %s5696_s11, 0 }
 0x20d   : > { %1272 = vadd.xlane.f32.xlu0 %v1271_v1 }
 0x20e   : > { %s1204_s3 = scalar_lea.vmem %s5720_s1, %s5292_s28  ;;  %s5724_s1 = sld [smem:[#allocation55_spill]] }
 0x20f   : > { %3628 = vmatpush3.bf16.msra.mxu0 %v4084_v10  ;;  %v1265_v51 = vld [vmem:[%s1204_s3] sm:$0xff]  ;;  %s5725_s3 = sld [smem:[#allocation42_spill]] }
 0x210   : > { %3641 = vmatprep.subr.bf16.mxu0 %v4765_v9  ;;  %vm1266_vm4 = vcmp.gt.f32.partialorder %v1265_v51, 0.0 }
 0x211   : > { %v5355_v53 = vsel %vm1266_vm4, 0.0, %v4768_v52 }
 0x29a   : > { %v1273_v2 = vpop.xlane.xlu0 %1272 }
 0x29b   : > { %v1275_v3 = vmul.f32 0.03125, %v1273_v2 }
 0x29d   : > { %v1276_v4 = vsub.f32 %v5296_v0, %v1275_v3 }
 0x29f   : > { %v1277_v5 = vmul.f32 %v1276_v4, %v1276_v4 }
 0x2a1   : > { %v1278_v6 = vsel %vm1270_vm0, %v1277_v5, 0.0 }
 0x2a2   : > { %1279 = vadd.xlane.f32.xlu0 %v1278_v6 }
 0x32f   : > { %v1280_v12 = vpop.xlane.xlu0 %1279 }
 0x330   : > { %v1281_v13 = vmul.f32 0.03125, %v1280_v12 }
 0x332   : > { %v1282_v14 = vadd.f32 1e-06, %v1281_v13 }
 0x334   : > { %4100 = vrsqrt.f32 %v1282_v14 }
 0x33e   : > { %v4101_v15 = vpop.eup %4100 }
 0x33f   : > { %v1284_v17 = vmul.f32 %v4101_v15, %v1276_v4 }
 0x341   : > { %v1291_v19 = vmul.f32 %v3481_v16, %v1284_v17 }
 0x343   : > { %v1298_v20 = vadd.f32 %v3482_v18, %v1291_v19  ;;  %v1227_v18 = vld [vmem:[#allocation20 + $0x4] sm:$0xf] }
 0x344   : > { %v1706_v19 = vsel %vm1543_vm3, %v1227_v18, 0 }
 0x345   : > { %v1299_v22 = vpack.c.bf16 %v1298_v20, %v1298_v20 }
 0x347   : > { %3630 = vmatmul.mubr.msk.bf16.vlgmr.msra.gmra.mrb[0].mxu0 %vm1270_vm0, %v1299_v22  ;;  %3638 = vmatmul.mubr.msk.bf16.vlgmr.msra.gmra.mrb[0].mxu1 %vm1270_vm0, %v1299_v22 }
 0x348   : > { %3642 = vmatpush3.bf16.msra.mxu0 %v4086_v21  ;;  %3645 = vmatprep.mubr.msk.bf16.mxu0 %vm4766_vm1, %v4765_v9 }
 0x349   : > { %3643 = vmatprep.subr.bf16.mxu0 %v4765_v9  ;;  %3651 = vmatprep.mubr.msk.bf16.mxu1 %vm4766_vm1, %v4765_v9 }
 0x34c   : > { %3644 = vmatpush3.bf16.msra.mxu0 %v4087_v23 }
 0x34d   : > { %3655 = vmatprep.subr.bf16.mxu0 %v4765_v9 }
 0x34f   : > { %3646 = vmatmul.mubr.msk.bf16.vlgmr.msra.gmra.mrb[4].mxu0 %vm1270_vm0, %v1299_v22 }
 0x350   : > { %3657 = vmatprep.mubr.msk.bf16.mxu0 %vm4766_vm1, %v4765_v9 }
 0x41a   : > { %v1355_v26 = vpop.f32.mrb[0].mxu0  ;;  %v1413_v27 = vpop.f32.mrb[0].mxu1 }
 0x41b   : > { %v1356_v28 = vadd.f32 %v3483_v24, %v1355_v26  ;;  %v1414_v29 = vadd.f32 %v3487_v25, %v1413_v27  ;;  %v3631_v30 = vpop.f32.mrb[1].mxu0  ;;  %v3639_v31 = vpop.f32.mrb[1].mxu1  ;;  %v1226_v24 = vld [vmem:[#allocation20] sm:$0xf] }
 0x41c   : > { %v1358_v32 = vpop.f32.mrb[2].mxu0  ;;  %v1416_v33 = vpop.f32.mrb[2].mxu1  ;;  %v1752_v27 = vsel %vm1543_vm3, %v1226_v24, 0 }
 0x41d   : > { %v1477_v34 = vmul.f32 0.35355338, %v1356_v28  ;;  %v5327_v35 = vpack.c.bf16 %v1414_v29, %v1414_v29  ;;  %v3632_v36 = vpop.f32.mrb[3].mxu0  ;;  %v3640_v37 = vpop.f32.mrb[3].mxu1 }
 0x41f   : > { %1592 = vrot.lane.b32.xlu1 %v5327_v35, %s4767_s8  ;;  %v1486_v38 = vsel %vm1481_vm2, %v5327_v35, 0  ;;  %v5333_v40 = vpack.c.bf16 %v1477_v34, %v1477_v34 }
 0x420   : > { %3650 = vmatpush3.bf16.xpose.msra.mxu1 %v1486_v38 }
 0x421   : > { %3661 = vmatprep.subr.bf16.mxu1 %v4765_v9 }
 0x422   : > { %v1471_v41 = vpop.f32.mrb[4].mxu0 }
 0x423   : > { %v1472_v42 = vadd.f32 %v3491_v39, %v1471_v41  ;;  %1589 = vrot.lane.b32.xlu1 %v5333_v40, %s4767_s8  ;;  %v3647_v43 = vpop.f32.mrb[5].mxu0 }
 0x424   : > { %v1474_v44 = vpop.f32.mrb[6].mxu0 }
 0x425   : > { %v5338_v45 = vpack.c.bf16 %v1472_v42, %v1472_v42  ;;  %v3648_v46 = vpop.f32.mrb[7].mxu0 }
 0x427   : > { %3652 = vmatmul.mubr.msk.bf16.vlgmr.msra.gmra.mrb[4].mxu1 %vm1481_vm2, %v5333_v40  ;;  %v1545_v47 = vsel %vm1543_vm3, %v5338_v45, 0 }
 0x428   : > { %3656 = vmatpush3.bf16.msra.mxu0 %v1545_v47  ;;  %3663 = vmatprep.mubr.msk.bf16.mxu1 %vm4766_vm1, %v4765_v9 }
 0x429   : > { %3667 = vmatprep.subr.bf16.mxu0 %v4765_v9 }
 0x491   : > { %v1593_v48 = vpop.permute.xlu1 %1592 }
 0x492   : > { %v1598_v49 = vsel %vm1481_vm2, %v1593_v48, 0 }
 0x493   : > { %3662 = vmatpush3.bf16.xpose.msra.mxu1 %v1598_v49 }
 0x494   : > { %3673 = vmatprep.subr.bf16.mxu1 %v4765_v9 }
 0x495   : > { %v1590_v50 = vpop.permute.xlu1 %1589 }
 0x49a   : > { %3664 = vmatmul.mubr.msk.bf16.vlgmr.msra.gmra.mrb[8].mxu1 %vm1481_vm2, %v1590_v50 }
 0x49b   : > { %3675 = vmatprep.mubr.msk.bf16.mxu1 %vm4766_vm1, %v4765_v9  ;;  %3674 = vmatpush3.bf16.msra.mxu1 %v1706_v19 }
 0x49c   : > { %3685 = vmatprep.subr.bf16.mxu1 %v4765_v9 }
 0x4fa   : > { %v1522_v54 = vpop.f32.mrb[4].mxu1 }
 0x4fb   : > { %v1523_v55 = vadd.f32 %v1522_v54, %v5355_v53  ;;  %v3653_v56 = vpop.f32.mrb[5].mxu1 }
 0x4fc   : > { %v1525_v57 = vpop.f32.mrb[6].mxu1 }
 0x4fd   : > { %v3654_v58 = vpop.f32.mrb[7].mxu1  ;;  %v1528_v59 = vsel %vm1481_vm2, %v1523_v55, -inf }
 0x4fe   : > { %1529 = vmax.xlane.f32.xlu0 %v1528_v59 }
 0x56d   : > { %v1634_v60 = vpop.f32.mrb[8].mxu1 }
 0x56e   : > { %v1635_v61 = vadd.f32 %v1634_v60, %v5355_v53  ;;  %v3665_v62 = vpop.f32.mrb[9].mxu1 }
 0x56f   : > { %v1637_v63 = vpop.f32.mrb[10].mxu1 }
 0x570   : > { %v3666_v1 = vpop.f32.mrb[11].mxu1  ;;  %v1640_v2 = vsel %vm1481_vm2, %v1635_v61, -inf }
 0x571   : > { %1641 = vmax.xlane.f32.xlu1 %v1640_v2 }
 0x582   : > { %1794 = vrot.lane.b32.xlu1 %v5333_v40, %s4769_s6 }
 0x58b   : > { %v1530_v3 = vpop.xlane.xlu0 %1529 }
 0x58c   : > { %v1531_v4 = vsub.f32 %v1523_v55, %v1530_v3 }
 0x58e   : > { %v1532_v5 = vmul.f32 1.442695, %v1531_v4 }
 0x590   : > { %4102 = vpow2.f32 %v1532_v5 }
 0x59a   : > { %v4103_v6 = vpop.eup %4102 }
 0x59b   : > { %v1534_v7 = vsel %vm1481_vm2, %v4103_v6, 0.0 }
 0x59c   : > { %1535 = vadd.xlane.f32.xlu0 %v1534_v7 }
 0x5fe   : > { %v1642_v8 = vpop.xlane.xlu1 %1641 }
 0x5ff   : > { %v1643_v10 = vsub.f32 %v1635_v61, %v1642_v8 }
 0x601   : > { %v1644_v11 = vmul.f32 1.442695, %v1643_v10 }
 0x602   : > { %v1795_v42 = vpop.permute.xlu1 %1794 }
 0x603   : > { %4104 = vpow2.f32 %v1644_v11 }
 0x60d   : > { %v4105_v12 = vpop.eup %4104 }
 0x60e   : > { %v1646_v13 = vsel %vm1481_vm2, %v4105_v12, 0.0 }
 0x60f   : > { %1647 = vadd.xlane.f32.xlu0 %v1646_v13 }
 0x625   : > { %1653 = vrot.lane.b32.xlu0 %v5338_v45, %s4767_s8 }
 0x629   : > { %v1536_v14 = vpop.xlane.xlu0 %1535  ;;  %1796 = vrot.lane.b32.xlu0 %v5327_v35, %s4769_s6 }
 0x62a   : > { %4106 = vrcp.f32 %v1536_v14 }
 0x634   : > { %v4107_v15 = vpop.eup %4106 }
 0x635   : > { %v1538_v16 = vmul.f32 %v4107_v15, %v4103_v6 }
 0x637   : > { %v1539_v17 = vpack.c.bf16 %v1538_v16, %v1538_v16 }
 0x639   : > { %3658 = vmatmul.mubr.msk.bf16.vlgmr.msra.gmra.mrb[8].mxu0 %vm1481_vm2, %v1539_v17 }
 0x63a   : > { %3669 = vmatprep.mubr.msk.bf16.mxu0 %vm4766_vm1, %v4765_v9 }
 0x69c   : > { %v1648_v20 = vpop.xlane.xlu0 %1647 }
 0x69d   : > { %4108 = vrcp.f32 %v1648_v20 }
 0x6a0   : > { %v1654_v21 = vpop.permute.xlu0 %1653 }
 0x6a1   : > { %v1659_v22 = vsel %vm1543_vm3, %v1654_v21, 0 }
 0x6a2   : > { %3668 = vmatpush3.bf16.msra.mxu0 %v1659_v22 }
 0x6a3   : > { %3679 = vmatprep.subr.bf16.mxu0 %v4765_v9 }
 0x6a4   : > { %v1797_v33 = vpop.permute.xlu0 %1796 }
 0x6a5   : > { %v1802_v39 = vsel %vm1481_vm2, %v1797_v33, 0 }
 0x6a7   : > { %v4109_v23 = vpop.eup %4108 }
 0x6a8   : > { %v1650_v25 = vmul.f32 %v4109_v23, %v4105_v12 }
 0x6aa   : > { %v1651_v26 = vpack.c.bf16 %v1650_v25, %v1650_v25 }
 0x6ac   : > { %3670 = vmatmul.mubr.msk.bf16.vlgmr.msra.gmra.mrb[12].mxu0 %vm1481_vm2, %v1651_v26 }
 0x6ad   : > { %3680 = vmatpush3.bf16.msra.mxu0 %v1752_v27  ;;  %3681 = vmatprep.mubr.msk.bf16.mxu0 %vm4766_vm1, %v4765_v9 }
 0x6ae   : > { %3691 = vmatprep.subr.bf16.mxu0 %v4765_v9 }
 0x70c   : > { %v1581_v28 = vpop.f32.mrb[8].mxu0 }
 0x70d   : > { %v1587_v29 = vpack.c.bf16 %v1581_v28, %v1581_v28  ;;  %v3659_v30 = vpop.f32.mrb[9].mxu0 }
 0x70e   : > { %v1584_v31 = vpop.f32.mrb[10].mxu0  ;;  %v1229_v30 = vld [vmem:[#allocation20 + $0xc] sm:$0xf] }
 0x70f   : > { %v3660_v32 = vpop.f32.mrb[11].mxu0  ;;  %3682 = vmatmul.mubr.msk.bf16.vlgmr.msra.gmra.mrb[16].mxu0 %vm1481_vm2, %v1587_v29  ;;  %v2067_v31 = vsel %vm1543_vm3, %v1229_v30, 0 }
 0x710   : > { %3693 = vmatprep.mubr.msk.bf16.mxu0 %vm4766_vm1, %v4765_v9 }
 0x77f   : > { %v1695_v34 = vpop.f32.mrb[12].mxu0 }
 0x780   : > { %v1701_v36 = vpack.c.bf16 %v1695_v34, %v1695_v34  ;;  %v3671_v37 = vpop.f32.mrb[13].mxu0 }
 0x781   : > { %v1698_v38 = vpop.f32.mrb[14].mxu0 }
 0x782   : > { %v3672_v41 = vpop.f32.mrb[15].mxu0  ;;  %3676 = vmatmul.mubr.msk.bf16.vlgmr.msra.gmra.mrb[12].mxu1 %vm1481_vm2, %v1701_v36 }
 0x783   : > { %3686 = vmatpush3.bf16.xpose.msra.mxu1 %v1802_v39  ;;  %3687 = vmatprep.mubr.msk.bf16.mxu1 %vm4766_vm1, %v4765_v9 }
 0x784   : > { %3697 = vmatprep.subr.bf16.mxu1 %v4765_v9 }
 0x78a   : > { %3688 = vmatmul.mubr.msk.bf16.vlgmr.msra.gmra.mrb[16].mxu1 %vm1481_vm2, %v1795_v42 }
 0x78b   : > { %3699 = vmatprep.mubr.msk.bf16.mxu1 %vm4766_vm1, %v4765_v9 }
 0x7e2   : > { %v1788_v43 = vpop.f32.mrb[16].mxu0 }
 0x7e3   : > { %v3683_v44 = vpop.f32.mrb[17].mxu0 }
 0x7e4   : > { %v1791_v46 = vpop.f32.mrb[18].mxu0 }
 0x7e5   : > { %v3684_v47 = vpop.f32.mrb[19].mxu0 }
 0x855   : > { %v1742_v48 = vpop.f32.mrb[12].mxu1 }
 0x856   : > { %v5392_v49 = vadd.f32 %v1788_v43, %v1742_v48  ;;  %v3677_v50 = vpop.f32.mrb[13].mxu1  ;;  %v3507_v48 = vld [vmem:[#allocation22] ss:$0 sm:$0xff] }
 0x857   : > { %v1745_v51 = vpop.f32.mrb[14].mxu1 }
 0x858   : > { %v3678_v54 = vpop.f32.mrb[15].mxu1 }
 0x85d   : > { %v1838_v55 = vpop.f32.mrb[16].mxu1 }
 0x85e   : > { %v1839_v56 = vadd.f32 %v1838_v55, %v5355_v53  ;;  %v3689_v57 = vpop.f32.mrb[17].mxu1 }
 0x85f   : > { %v1841_v58 = vpop.f32.mrb[18].mxu1 }
 0x860   : > { %v3690_v59 = vpop.f32.mrb[19].mxu1  ;;  %v1844_v60 = vsel %vm1481_vm2, %v1839_v56, -inf }
 0x861   : > { %1845 = vmax.xlane.f32.xlu0 %v1844_v60 }
 0x877   : > { %1856 = vrot.lane.b32.xlu0 %v5338_v45, %s4769_s6 }
 0x87b   : > { %1952 = vrot.lane.b32.xlu0 %v5333_v40, %s4770_s5 }
 0x8ee   : > { %v1846_v61 = vpop.xlane.xlu0 %1845 }
 0x8ef   : > { %v1847_v62 = vsub.f32 %v1839_v56, %v1846_v61 }
 0x8f1   : > { %v1848_v63 = vmul.f32 1.442695, %v1847_v62 }
 0x8f2   : > { %v1857_v1 = vpop.permute.xlu0 %1856 }
 0x8f3   : > { %4110 = vpow2.f32 %v1848_v63  ;;  %v1862_v2 = vsel %vm1543_vm3, %v1857_v1, 0  ;;  %v4088_v1 = vld [vmem:[#allocation23] sm:$0xff]  }
 0x8f4   : > { %3692 = vmatpush3.bf16.msra.mxu0 %v1862_v2  ;;  %v1207_v2 = vld [vmem:[%s5252_s2] sm:$0xf]  ;;  %s5723_s2 = sld [smem:[#allocation52_spill]] }
 0x8f5   : > { %3703 = vmatprep.subr.bf16.mxu0 %v4765_v9 }
 0x8f6   : > { %v1953_v11 = vpop.permute.xlu0 %1952 }
 0x8fd   : > { %v4111_v3 = vpop.eup %4110 }
 0x8fe   : > { %v1850_v4 = vsel %vm1481_vm2, %v4111_v3, 0.0 }
 0x8ff   : > { %1851 = vadd.xlane.f32.xlu1 %v1850_v4  ;;  %v4091_v4 = vld [vmem:[%s5721_s4 + $0x8] sm:$0xff]  }
 0x910   : > { %1954 = vrot.lane.b32.xlu1 %v5327_v35, %s4770_s5  ;;  %v1228_v35 = vld [vmem:[#allocation20 + $0x8] sm:$0xf] }
 0x911   : > { %v1909_v12 = vsel %vm1543_vm3, %v1228_v35, 0 }
 0x912   : > { %3698 = vmatpush3.bf16.msra.mxu1 %v1909_v12 }
 0x913   : > { %3709 = vmatprep.subr.bf16.mxu1 %v4765_v9 }
 0x98c   : > { %v1852_v5 = vpop.xlane.xlu1 %1851 }
 0x98d   : > { %4112 = vrcp.f32 %v1852_v5 }
 0x990   : > { %v1955_v7 = vpop.permute.xlu1 %1954 }
 0x991   : > { %v1960_v10 = vsel %vm1481_vm2, %v1955_v7, 0 }
 0x997   : > { %v4113_v40 = vpop.eup %4112 }
 0x998   : > { %v1854_v6 = vmul.f32 %v4113_v40, %v4111_v3  ;;  %v4090_v3 = vld [vmem:[%s5721_s4] sm:$0xff]  }
 0x99a   : > { %v1855_v8 = vpack.c.bf16 %v1854_v6, %v1854_v6 }
 0x99c   : > { %3694 = vmatmul.mubr.msk.bf16.vlgmr.msra.gmra.mrb[20].mxu0 %vm1481_vm2, %v1855_v8  ;;  %v3508_v8 = vld [vmem:[#allocation8] ss:$0 sm:$0xff] }
 0x99d   : > { %3704 = vmatpush3.bf16.xpose.msra.mxu0 %v1960_v10  ;;  %3705 = vmatprep.mubr.msk.bf16.mxu0 %vm4766_vm1, %v4765_v9 }
 0x99e   : > { %3715 = vmatprep.subr.bf16.mxu0 %v4765_v9 }
 0x9a4   : > { %3706 = vmatmul.mubr.msk.bf16.vlgmr.msra.gmra.mrb[24].mxu0 %vm1481_vm2, %v1953_v11  ;;  %v3509_v11 = vld [vmem:[#allocation10] ss:$0 sm:$0xff] }
 0x9a5   : > { %3717 = vmatprep.mubr.msk.bf16.mxu0 %vm4766_vm1, %v4765_v9  ;;  %3716 = vmatpush3.bf16.msra.mxu0 %v2067_v31  ;;  %v4092_v31 = vld [vmem:[%s5724_s1] sm:$0xff]  }
 0x9a6   : > { %3729 = vmatprep.subr.bf16.mxu0 %v4765_v9 }
 0xa6f   : > { %v1898_v13 = vpop.f32.mrb[20].mxu0 }
 0xa70   : > { %v1904_v14 = vpack.c.bf16 %v1898_v13, %v1898_v13  ;;  %v3695_v15 = vpop.f32.mrb[21].mxu0 }
 0xa71   : > { %v1901_v16 = vpop.f32.mrb[22].mxu0 }
 0xa72   : > { %v3696_v17 = vpop.f32.mrb[23].mxu0  ;;  %3700 = vmatmul.mubr.msk.bf16.vlgmr.msra.gmra.mrb[20].mxu1 %vm1481_vm2, %v1904_v14  ;;  %v3514_v14 = vld [vmem:[%s5722_s13] ss:$0 sm:$0xff]  ;;  %s1200_s13 = scalar_lea.vmem %s5725_s3, %s5292_s28  ;;  %s5726_s28 = sld [smem:[#allocation59_spill]] }
 0xa73   : > { %3711 = vmatprep.mubr.msk.bf16.mxu1 %vm4766_vm1, %v4765_v9 }
 0xa77   : > { %v1996_v18 = vpop.f32.mrb[24].mxu0 }
 0xa78   : > { %v1997_v19 = vadd.f32 %v1996_v18, %v5355_v53  ;;  %v3707_v20 = vpop.f32.mrb[25].mxu0 }
 0xa79   : > { %v1999_v21 = vpop.f32.mrb[26].mxu0 }
 0xa7a   : > { %v3708_v22 = vpop.f32.mrb[27].mxu0  ;;  %v2002_v23 = vsel %vm1481_vm2, %v1997_v19, -inf }
 0xa7b   : > { %2003 = vmax.xlane.f32.xlu0 %v2002_v23  ;;  %v3510_v22 = vld [vmem:[%s5723_s2] ss:$0 sm:$0xff]  ;;  %s3548_s2 = sshll.u32 %s4953_s26, 7  ;;  %s4771_s26 = smov [#allocation29]  }
 0xa91   : > { %2014 = vrot.lane.b32.xlu0 %v5338_v45, %s4770_s5 }
 0xb08   : > { %v2004_v24 = vpop.xlane.xlu0 %2003 }
 0xb09   : > { %v2005_v25 = vsub.f32 %v1997_v19, %v2004_v24 }
 0xb0b   : > { %v2006_v26 = vmul.f32 1.442695, %v2005_v25 }
 0xb0c   : > { %v2015_v27 = vpop.permute.xlu0 %2014 }
 0xb0d   : > { %4114 = vpow2.f32 %v2006_v26  ;;  %v2020_v28 = vsel %vm1543_vm3, %v2015_v27, 0 }
 0xb0e   : > { %3710 = vmatpush3.bf16.msra.mxu1 %v2020_v28 }
 0xb0f   : > { %3721 = vmatprep.subr.bf16.mxu1 %v4765_v9 }
 0xb17   : > { %v4115_v53 = vpop.eup %4114 }
 0xb18   : > { %v2008_v29 = vsel %vm1481_vm2, %v4115_v53, 0.0 }
 0xb19   : > { %2009 = vadd.xlane.f32.xlu1 %v2008_v29 }
 0xb45   : > { %v1945_v45 = vpop.f32.mrb[20].mxu1 }
 0xb46   : > { %v1951_v32 = vadd.f32 %v1945_v45, %v5392_v49  ;;  %v3701_v33 = vpop.f32.mrb[21].mxu1  ;;  %v4093_v45 = vld [vmem:[%s5724_s1 + $0x8] sm:$0xff]  }
 0xb47   : > { %v1948_v34 = vpop.f32.mrb[22].mxu1  ;;  %v1208_v33 = vld [vmem:[%s1200_s13] sm:$0xff] }
 0xb48   : > { %v3702_v36 = vpop.f32.mrb[23].mxu1  ;;  %vm1209_vm5 = vcmp.gt.f32.partialorder %v1208_v33, 0.0 }
 0xb49   : > { %v5486_v34 = vsel %vm1209_vm5, 0.0, %v4768_v52 }
 0xba6   : > { %v2010_v37 = vpop.xlane.xlu1 %2009 }
 0xba7   : > { %4116 = vrcp.f32 %v2010_v37 }
 0xbb1   : > { %v4117_v38 = vpop.eup %4116 }
 0xbb2   : > { %v2012_v39 = vmul.f32 %v4117_v38, %v4115_v53 }
 0xbb4   : > { %v2013_v41 = vpack.c.bf16 %v2012_v39, %v2012_v39 }
 0xbb6   : > { %3712 = vmatmul.mubr.msk.bf16.vlgmr.msra.gmra.mrb[24].mxu1 %vm1481_vm2, %v2013_v41 }
 0xbb7   : > { %3725 = vmatprep.mubr.msk.bf16.mxu1 %vm4766_vm1, %v4765_v9  ;;  %3722 = vmatpush3.bf16.msra.mxu1 %v4090_v3 }
 0xbb8   : > { %3723 = vmatprep.subr.bf16.mxu1 %v4765_v9 }
 0xbbb   : > { %3724 = vmatpush3.bf16.msra.mxu1 %v4091_v4 }
 0xbbc   : > { %3737 = vmatprep.subr.bf16.mxu1 %v4765_v9 }
 0xc89   : > { %v2056_v42 = vpop.f32.mrb[24].mxu1 }
 0xc8a   : > { %v2062_v43 = vpack.c.bf16 %v2056_v42, %v2056_v42  ;;  %v3713_v44 = vpop.f32.mrb[25].mxu1 }
 0xc8b   : > { %v2059_v46 = vpop.f32.mrb[26].mxu1 }
 0xc8c   : > { %v3714_v47 = vpop.f32.mrb[27].mxu1  ;;  %3718 = vmatmul.mubr.msk.bf16.vlgmr.msra.gmra.mrb[28].mxu0 %vm1481_vm2, %v2062_v43 }
 0xc8d   : > { %3733 = vmatprep.mubr.msk.bf16.mxu0 %vm4766_vm1, %v4765_v9  ;;  %3730 = vmatpush3.bf16.msra.mxu0 %v4088_v1 }
 0xc8e   : > { %3731 = vmatprep.subr.bf16.mxu0 %v4765_v9 }
 0xd5f   : > { %v2103_v49 = vpop.f32.mrb[28].mxu0 }
 0xd60   : > { %v2109_v50 = vadd.f32 %v2103_v49, %v1951_v32  ;;  %v3719_v51 = vpop.f32.mrb[29].mxu0 }
 0xd61   : > { %v2106_v54 = vpop.f32.mrb[30].mxu0 }
 0xd62   : > { %v2116_v55 = vadd.f32 %v3507_v48, %v2109_v50  ;;  %v3720_v56 = vpop.f32.mrb[31].mxu0 }
 0xd64   : > { %v5435_v57 = vadd.f32 %v2116_v55, %v5296_v0  ;;  %v4089_v0 = vld [vmem:[#allocation23 + $0x8] sm:$0xff]  }
 0xd65   : > { %3732 = vmatpush3.bf16.msra.mxu0 %v4089_v0 }
 0xd66   : > { %v2120_v58 = vsel %vm1270_vm0, %v5435_v57, 0.0  ;;  %3745 = vmatprep.subr.bf16.mxu0 %v4765_v9 }
 0xd67   : > { %2121 = vadd.xlane.f32.xlu1 %v2120_v58 }
 0xd68   : > { %3734 = vmatmul.mubr.msk.bf16.vlgmr.msra.gmra.mrb[32].mxu0 %vm1270_vm0, %v1207_v2 }
 0xd69   : > { %3747 = vmatprep.mubr.msk.bf16.mxu0 %vm4766_vm1, %v4765_v9 }
 0xdf4   : > { %v2122_v59 = vpop.xlane.xlu1 %2121 }
 0xdf5   : > { %v2123_v60 = vmul.f32 0.03125, %v2122_v59 }
 0xdf7   : > { %v2124_v61 = vsub.f32 %v5435_v57, %v2123_v60 }
 0xdf9   : > { %v2125_v62 = vmul.f32 %v2124_v61, %v2124_v61 }
 0xdfb   : > { %v2126_v63 = vsel %vm1270_vm0, %v2125_v62, 0.0 }
 0xdfc   : > { %2127 = vadd.xlane.f32.xlu1 %v2126_v63 }
 0xe3b   : > { %v2264_v15 = vpop.f32.mrb[32].mxu0 }
 0xe3c   : > { %v2265_v16 = vadd.f32 %v3514_v14, %v2264_v15  ;;  %v3735_v17 = vpop.f32.mrb[33].mxu0  ;;  %v1246_v15 = vld [vmem:[#allocation26] sm:$0xf] }
 0xe3d   : > { %v2267_v18 = vpop.f32.mrb[34].mxu0 }
 0xe3e   : > { %v5455_v19 = vpack.c.bf16 %v2265_v16, %v2265_v16  ;;  %v3736_v20 = vpop.f32.mrb[35].mxu0  ;;  %v2601_v18 = vsel %vm1543_vm3, %v1246_v15, 0 }
 0xe40   : > { %2441 = vrot.lane.b32.xlu0 %v5455_v19, %s4767_s8  ;;  %v2336_v21 = vsel %vm1481_vm2, %v5455_v19, 0 }
 0xe41   : > { %3746 = vmatpush3.bf16.xpose.msra.mxu0 %v2336_v21 }
 0xe42   : > { %3757 = vmatprep.subr.bf16.mxu0 %v4765_v9 }
 0xe89   : > { %v2128_v5 = vpop.xlane.xlu1 %2127 }
 0xe8a   : > { %v2129_v40 = vmul.f32 0.03125, %v2128_v5 }
 0xe8c   : > { %v2130_v6 = vadd.f32 1e-06, %v2129_v40 }
 0xe8e   : > { %4118 = vrsqrt.f32 %v2130_v6 }
 0xe98   : > { %v4119_v7 = vpop.eup %4118 }
 0xe99   : > { %v2132_v10 = vmul.f32 %v4119_v7, %v2124_v61  ;;  %v3518_v61 = vld [vmem:[#allocation25] ss:$0 sm:$0xff] }
 0xe9b   : > { %v2139_v35 = vmul.f32 %v3508_v8, %v2132_v10  ;;  %v1247_v10 = vld [vmem:[#allocation26 + $0x4] sm:$0xf] }
 0xe9d   : > { %v2146_v12 = vadd.f32 %v3509_v11, %v2139_v35  ;;  %v2555_v11 = vsel %vm1543_vm3, %v1247_v10, 0 }
 0xe9f   : > { %v2147_v13 = vpack.c.bf16 %v2146_v12, %v2146_v12 }
 0xea1   : > { %3726 = vmatmul.mubr.msk.bf16.vlgmr.msra.gmra.mrb[28].mxu1 %vm1270_vm0, %v2147_v13 }
 0xea2   : > { %3741 = vmatprep.mubr.msk.bf16.mxu1 %vm4766_vm1, %v4765_v9  ;;  %3738 = vmatpush3.bf16.msra.mxu1 %v4092_v31 }
 0xea3   : > { %3739 = vmatprep.subr.bf16.mxu1 %v4765_v9 }
 0xea6   : > { %3740 = vmatpush3.bf16.msra.mxu1 %v4093_v45 }
 0xea7   : > { %3751 = vmatprep.subr.bf16.mxu1 %v4765_v9 }
 0xea9   : > { %3742 = vmatmul.mubr.msk.bf16.vlgmr.msra.gmra.mrb[32].mxu1 %vm1270_vm0, %v1207_v2 }
 0xeaa   : > { %3753 = vmatprep.mubr.msk.bf16.mxu1 %vm4766_vm1, %v4765_v9 }
 0xeb2   : > { %v2442_v27 = vpop.permute.xlu0 %2441 }
 0xeb3   : > { %v2447_v30 = vsel %vm1481_vm2, %v2442_v27, 0 }
 0xf74   : > { %v2203_v23 = vpop.f32.mrb[28].mxu1 }
 0xf75   : > { %v2204_v24 = vadd.f32 %v3510_v22, %v2203_v23  ;;  %v3727_v25 = vpop.f32.mrb[29].mxu1 }
 0xf76   : > { %v2206_v26 = vpop.f32.mrb[30].mxu1 }
 0xf77   : > { %v2328_v28 = vmul.f32 0.35355338, %v2204_v24  ;;  %v3728_v53 = vpop.f32.mrb[31].mxu1 }
 0xf79   : > { %v5463_v29 = vpack.c.bf16 %v2328_v28, %v2328_v28 }
 0xf7b   : > { %2438 = vrot.lane.b32.xlu1 %v5463_v29, %s4767_s8  ;;  %3748 = vmatmul.mubr.msk.bf16.vlgmr.msra.gmra.mrb[36].mxu0 %vm1481_vm2, %v5463_v29 }
 0xf7c   : > { %3758 = vmatpush3.bf16.xpose.msra.mxu0 %v2447_v30  ;;  %3759 = vmatprep.mubr.msk.bf16.mxu0 %vm4766_vm1, %v4765_v9  ;;  %v2322_v54 = vpop.f32.mrb[32].mxu1 }
 0xf7d   : > { %3769 = vmatprep.subr.bf16.mxu0 %v4765_v9  ;;  %v3743_v55 = vpop.f32.mrb[33].mxu1  ;;  %v2323_v62 = vadd.f32 %v3518_v61, %v2322_v54 }
 0xf7e   : > { %v2325_v56 = vpop.f32.mrb[34].mxu1 }
 0xf7f   : > { %v3744_v58 = vpop.f32.mrb[35].mxu1  ;;  %v5495_v63 = vpack.c.bf16 %v2323_v62, %v2323_v62 }
 0xf81   : > { %v2394_v1 = vsel %vm1543_vm3, %v5495_v63, 0 }
 0xf82   : > { %3752 = vmatpush3.bf16.msra.mxu1 %v2394_v1 }
 0xf83   : > { %3763 = vmatprep.subr.bf16.mxu1 %v4765_v9 }
 0xfed   : > { %v2439_v32 = vpop.permute.xlu1 %2438 }
 0xfee   : > { %3760 = vmatmul.mubr.msk.bf16.vlgmr.msra.gmra.mrb[40].mxu0 %vm1481_vm2, %v2439_v32 }
 0xfef   : > { %3771 = vmatprep.mubr.msk.bf16.mxu0 %vm4766_vm1, %v4765_v9  ;;  %3770 = vmatpush3.bf16.msra.mxu0 %v2555_v11 }
 0xff0   : > { %3781 = vmatprep.subr.bf16.mxu0 %v4765_v9 }
0x104e   : > { %v2372_v36 = vpop.f32.mrb[36].mxu0 }
0x104f   : > { %v2373_v37 = vadd.f32 %v2372_v36, %v5486_v34  ;;  %v3749_v38 = vpop.f32.mrb[37].mxu0 }
0x1050   : > { %v2375_v39 = vpop.f32.mrb[38].mxu0 }
0x1051   : > { %v3750_v41 = vpop.f32.mrb[39].mxu0  ;;  %v2378_v42 = vsel %vm1481_vm2, %v2373_v37, -inf }
0x1052   : > { %2379 = vmax.xlane.f32.xlu0 %v2378_v42 }
0x10c1   : > { %v2483_v43 = vpop.f32.mrb[40].mxu0 }
0x10c2   : > { %v2484_v44 = vadd.f32 %v2483_v43, %v5486_v34  ;;  %v3761_v46 = vpop.f32.mrb[41].mxu0 }
0x10c3   : > { %v2486_v47 = vpop.f32.mrb[42].mxu0 }
0x10c4   : > { %v3762_v48 = vpop.f32.mrb[43].mxu0  ;;  %v2489_v49 = vsel %vm1481_vm2, %v2484_v44, -inf }
0x10c5   : > { %2490 = vmax.xlane.f32.xlu1 %v2489_v49 }
0x10d6   : > { %2645 = vrot.lane.b32.xlu1 %v5455_v19, %s4769_s6 }
0x10df   : > { %v2380_v52 = vpop.xlane.xlu0 %2379 }
0x10e0   : > { %v2381_v50 = vsub.f32 %v2373_v37, %v2380_v52 }
0x10e2   : > { %v2382_v51 = vmul.f32 1.442695, %v2381_v50 }
0x10e4   : > { %4120 = vpow2.f32 %v2382_v51 }
0x10ee   : > { %v4121_v59 = vpop.eup %4120 }
0x10ef   : > { %v2384_v60 = vsel %vm1481_vm2, %v4121_v59, 0.0 }
0x10f0   : > { %2385 = vadd.xlane.f32.xlu0 %v2384_v60 }
0x1152   : > { %v2491_v0 = vpop.xlane.xlu1 %2490 }
0x1153   : > { %v2492_v2 = vsub.f32 %v2484_v44, %v2491_v0 }
0x1155   : > { %v2493_v3 = vmul.f32 1.442695, %v2492_v2 }
0x1156   : > { %v2646_v25 = vpop.permute.xlu1 %2645 }
0x1157   : > { %4122 = vpow2.f32 %v2493_v3  ;;  %v2651_v30 = vsel %vm1481_vm2, %v2646_v25, 0 }
0x1161   : > { %v4123_v4 = vpop.eup %4122 }
0x1162   : > { %v2495_v5 = vsel %vm1481_vm2, %v4123_v4, 0.0 }
0x1163   : > { %2496 = vadd.xlane.f32.xlu0 %v2495_v5 }
0x1179   : > { %2502 = vrot.lane.b32.xlu0 %v5495_v63, %s4767_s8  ;;  %s5727_s8 = sld [smem:[#allocation60_spill]] }
0x117d   : > { %v2386_v40 = vpop.xlane.xlu0 %2385  ;;  %2643 = vrot.lane.b32.xlu0 %v5463_v29, %s4769_s6 }
0x117e   : > { %4124 = vrcp.f32 %v2386_v40 }
0x1188   : > { %v4125_v6 = vpop.eup %4124 }
0x1189   : > { %v2388_v7 = vmul.f32 %v4125_v6, %v4121_v59 }
0x118b   : > { %v2389_v8 = vpack.c.bf16 %v2388_v7, %v2388_v7 }
0x118d   : > { %3754 = vmatmul.mubr.msk.bf16.vlgmr.msra.gmra.mrb[36].mxu1 %vm1481_vm2, %v2389_v8 }
0x118e   : > { %3765 = vmatprep.mubr.msk.bf16.mxu1 %vm4766_vm1, %v4765_v9 }
0x11f0   : > { %v2497_v35 = vpop.xlane.xlu0 %2496 }
0x11f1   : > { %4126 = vrcp.f32 %v2497_v35 }
0x11f4   : > { %v2503_v12 = vpop.permute.xlu0 %2502 }
0x11f5   : > { %v2508_v13 = vsel %vm1543_vm3, %v2503_v12, 0 }
0x11f6   : > { %3764 = vmatpush3.bf16.msra.mxu1 %v2508_v13 }
0x11f7   : > { %3775 = vmatprep.subr.bf16.mxu1 %v4765_v9 }
0x11f8   : > { %v2644_v45 = vpop.permute.xlu0 %2643 }
0x11fb   : > { %v4127_v14 = vpop.eup %4126 }
0x11fc   : > { %v2499_v16 = vmul.f32 %v4127_v14, %v4123_v4 }
0x11fe   : > { %v2500_v17 = vpack.c.bf16 %v2499_v16, %v2499_v16 }
0x1200   : > { %3766 = vmatmul.mubr.msk.bf16.vlgmr.msra.gmra.mrb[40].mxu1 %vm1481_vm2, %v2500_v17 }
0x1201   : > { %3776 = vmatpush3.bf16.msra.mxu1 %v2601_v18  ;;  %3777 = vmatprep.mubr.msk.bf16.mxu1 %vm4766_vm1, %v4765_v9 }
0x1202   : > { %3787 = vmatprep.subr.bf16.mxu1 %v4765_v9 }
0x1260   : > { %v2430_v20 = vpop.f32.mrb[36].mxu1 }
0x1261   : > { %v2436_v21 = vpack.c.bf16 %v2430_v20, %v2430_v20  ;;  %v3755_v22 = vpop.f32.mrb[37].mxu1  ;;  %v1249_v20 = vld [vmem:[#allocation26 + $0xc] sm:$0xf] }
0x1262   : > { %v2433_v23 = vpop.f32.mrb[38].mxu1 }
0x1263   : > { %v3756_v24 = vpop.f32.mrb[39].mxu1  ;;  %3778 = vmatmul.mubr.msk.bf16.vlgmr.msra.gmra.mrb[44].mxu1 %vm1481_vm2, %v2436_v21 }
0x1264   : > { %3789 = vmatprep.mubr.msk.bf16.mxu1 %vm4766_vm1, %v4765_v9 }
0x12d3   : > { %v2544_v26 = vpop.f32.mrb[40].mxu1 }
0x12d4   : > { %v2550_v27 = vpack.c.bf16 %v2544_v26, %v2544_v26  ;;  %v3767_v28 = vpop.f32.mrb[41].mxu1 }
0x12d5   : > { %v2547_v53 = vpop.f32.mrb[42].mxu1 }
0x12d6   : > { %v3768_v31 = vpop.f32.mrb[43].mxu1  ;;  %3772 = vmatmul.mubr.msk.bf16.vlgmr.msra.gmra.mrb[44].mxu0 %vm1481_vm2, %v2550_v27 }
0x12d7   : > { %3782 = vmatpush3.bf16.xpose.msra.mxu0 %v2651_v30  ;;  %3783 = vmatprep.mubr.msk.bf16.mxu0 %vm4766_vm1, %v4765_v9 }
0x12d8   : > { %3793 = vmatprep.subr.bf16.mxu0 %v4765_v9 }
0x12de   : > { %3784 = vmatmul.mubr.msk.bf16.vlgmr.msra.gmra.mrb[48].mxu0 %vm1481_vm2, %v2644_v45 }
0x12df   : > { %3795 = vmatprep.mubr.msk.bf16.mxu0 %vm4766_vm1, %v4765_v9 }
0x1336   : > { %v2637_v32 = vpop.f32.mrb[44].mxu1 }
0x1337   : > { %v3779_v33 = vpop.f32.mrb[45].mxu1 }
0x1338   : > { %v2640_v36 = vpop.f32.mrb[46].mxu1 }
0x1339   : > { %v3780_v37 = vpop.f32.mrb[47].mxu1 }
0x133a   : > { %v3534_v37 = vld [vmem:[#allocation28] ss:$0 sm:$0xff] }
0x13a9   : > { %v2591_v38 = vpop.f32.mrb[44].mxu0 }
0x13aa   : > { %v5528_v39 = vadd.f32 %v2637_v32, %v2591_v38  ;;  %v3773_v41 = vpop.f32.mrb[45].mxu0 }
0x13ab   : > { %v2594_v42 = vpop.f32.mrb[46].mxu0 }
0x13ac   : > { %v3774_v43 = vpop.f32.mrb[47].mxu0 }
0x13b1   : > { %v2687_v44 = vpop.f32.mrb[48].mxu0 }
0x13b2   : > { %v2688_v46 = vadd.f32 %v2687_v44, %v5486_v34  ;;  %v3785_v47 = vpop.f32.mrb[49].mxu0 }
0x13b3   : > { %v2690_v48 = vpop.f32.mrb[50].mxu0 }
0x13b4   : > { %v3786_v49 = vpop.f32.mrb[51].mxu0  ;;  %v2693_v52 = vsel %vm1481_vm2, %v2688_v46, -inf }
0x13b5   : > { %2694 = vmax.xlane.f32.xlu0 %v2693_v52 }
0x13cb   : > { %2705 = vrot.lane.b32.xlu0 %v5495_v63, %s4769_s6  ;;  %s5728_s6 = sld [smem:[#allocation61_spill]] }
0x13cf   : > { %2801 = vrot.lane.b32.xlu0 %v5463_v29, %s4770_s5 }
0x13d1   : > { %s5589_s1 = scalar_lea.hbm %s5728_s6, %s3548_s2 }
0x1442   : > { %v2695_v50 = vpop.xlane.xlu0 %2694 }
0x1443   : > { %v2696_v51 = vsub.f32 %v2688_v46, %v2695_v50 }
0x1445   : > { %v2697_v54 = vmul.f32 1.442695, %v2696_v51 }
0x1446   : > { %v2706_v55 = vpop.permute.xlu0 %2705 }
0x1447   : > { %4128 = vpow2.f32 %v2697_v54  ;;  %v2711_v56 = vsel %vm1543_vm3, %v2706_v55, 0  ;;  %v4094_v54 = vld [vmem:[%s5726_s28] sm:$0xff]   ;;  %v4095_v55 = vld [vmem:[%s5726_s28 + $0x8] sm:$0xff]  }
0x1448   : > { %3788 = vmatpush3.bf16.msra.mxu1 %v2711_v56  ;;  %v4096_v56 = vld [vmem:[%s4920_s17] sm:$0xff]  }
0x1449   : > { %3799 = vmatprep.subr.bf16.mxu1 %v4765_v9 }
0x144a   : > { %v2802_v2 = vpop.permute.xlu0 %2801 }
0x1451   : > { %v4129_v58 = vpop.eup %4128 }
0x1452   : > { %v2699_v59 = vsel %vm1481_vm2, %v4129_v58, 0.0 }
0x1453   : > { %2700 = vadd.xlane.f32.xlu1 %v2699_v59 }
0x1464   : > { %2803 = vrot.lane.b32.xlu1 %v5455_v19, %s4770_s5  ;;  %v1248_v19 = vld [vmem:[#allocation26 + $0x8] sm:$0xf] }
0x1465   : > { %v2758_v3 = vsel %vm1543_vm3, %v1248_v19, 0 }
0x1466   : > { %3794 = vmatpush3.bf16.msra.mxu0 %v2758_v3  ;;  %v4098_v3 = vld [vmem:[%s4920_s17 + $0x10] sm:$0xff]  }
0x1467   : > { %3805 = vmatprep.subr.bf16.mxu0 %v4765_v9 }
0x14e0   : > { %v2701_v60 = vpop.xlane.xlu1 %2700 }
0x14e1   : > { %4130 = vrcp.f32 %v2701_v60 }
0x14e4   : > { %v2804_v62 = vpop.permute.xlu1 %2803 }
0x14e5   : > { %v2809_v0 = vsel %vm1481_vm2, %v2804_v62, 0 }
0x14eb   : > { %v4131_v29 = vpop.eup %4130 }
0x14ec   : > { %v2703_v61 = vmul.f32 %v4131_v29, %v4129_v58 }
0x14ee   : > { %v2704_v1 = vpack.c.bf16 %v2703_v61, %v2703_v61  ;;  %v3535_v61 = vld [vmem:[#allocation11] ss:$0 sm:$0xff] }
0x14f0   : > { %3790 = vmatmul.mubr.msk.bf16.vlgmr.msra.gmra.mrb[48].mxu1 %vm1481_vm2, %v2704_v1  ;;  %v3536_v1 = vld [vmem:[#allocation13] ss:$0 sm:$0xff] }
0x14f1   : > { %3800 = vmatpush3.bf16.xpose.msra.mxu1 %v2809_v0  ;;  %3801 = vmatprep.mubr.msk.bf16.mxu1 %vm4766_vm1, %v4765_v9 }
0x14f2   : > { %3811 = vmatprep.subr.bf16.mxu1 %v4765_v9 }
0x14f8   : > { %3802 = vmatmul.mubr.msk.bf16.vlgmr.msra.gmra.mrb[52].mxu1 %vm1481_vm2, %v2802_v2 }
0x14f9   : > { %3813 = vmatprep.mubr.msk.bf16.mxu1 %vm4766_vm1, %v4765_v9 }
0x15c3   : > { %v2747_v4 = vpop.f32.mrb[48].mxu1 }
0x15c4   : > { %v2753_v5 = vpack.c.bf16 %v2747_v4, %v2747_v4  ;;  %v3791_v40 = vpop.f32.mrb[49].mxu1  ;;  %v4099_v4 = vld [vmem:[%s4920_s17 + $0x18] sm:$0xff]  }
0x15c5   : > { %v2750_v6 = vpop.f32.mrb[50].mxu1 }
0x15c6   : > { %v3792_v7 = vpop.f32.mrb[51].mxu1  ;;  %3796 = vmatmul.mubr.msk.bf16.vlgmr.msra.gmra.mrb[52].mxu0 %vm1481_vm2, %v2753_v5  ;;  %v3537_v5 = vld [vmem:[%s4915_s9] ss:$0 sm:$0xff] }
0x15c7   : > { %3807 = vmatprep.mubr.msk.bf16.mxu0 %vm4766_vm1, %v4765_v9 }
0x15cb   : > { %v2845_v8 = vpop.f32.mrb[52].mxu1 }
0x15cc   : > { %v2846_v10 = vadd.f32 %v2845_v8, %v5486_v34  ;;  %v3803_v11 = vpop.f32.mrb[53].mxu1  ;;  %v2916_v34 = vsel %vm1543_vm3, %v1249_v20, 0 }
0x15cd   : > { %v2848_v35 = vpop.f32.mrb[54].mxu1  ;;  %3812 = vmatpush3.bf16.msra.mxu1 %v2916_v34 }
0x15ce   : > { %v3804_v12 = vpop.f32.mrb[55].mxu1  ;;  %v2851_v13 = vsel %vm1481_vm2, %v2846_v10, -inf  ;;  %3825 = vmatprep.subr.bf16.mxu1 %v4765_v9 }
0x15cf   : > { %2852 = vmax.xlane.f32.xlu1 %v2851_v13  ;;  %v3541_v12 = vld [vmem:[%s5727_s8] ss:$0 sm:$0xff]  ;;  %s3137_s8 = scalar_lea.sflag [#allocation4], %s5248_s14 }
0x165c   : > { %v2853_v14 = vpop.xlane.xlu1 %2852 }
0x165d   : > { %v2854_v15 = vsub.f32 %v2846_v10, %v2853_v14 }
0x165f   : > { %v2855_v16 = vmul.f32 1.442695, %v2854_v15 }
0x1661   : > { %4132 = vpow2.f32 %v2855_v16 }
0x166b   : > { %v4133_v17 = vpop.eup %4132 }
0x166c   : > { %v2857_v18 = vsel %vm1481_vm2, %v4133_v17, 0.0 }
0x166d   : > { %2858 = vadd.xlane.f32.xlu0 %v2857_v18 }
0x1683   : > { %2863 = vrot.lane.b32.xlu0 %v5495_v63, %s4770_s5  ;;  %s3477_s5 = sshll.u32 %s5248_s14, 3 }
0x1684   : > { %s1192_s3 = scalar_lea.vmem [#allocation29], %s3477_s5  ;;  %s4620_s5 = sshll.u32 %s4771_s26, 4  ;;  %s4621_s5 = int_to_ptr.vmem [resolvable:$false] %s4620_s5 }
0x1685   : > { %s3150_s13 = sshll.u32 %s1192_s3, 4  ;;  %s4622_s7 = scalar_lea.vmem %s4621_s5, 256  ;;  %s5591_s13 = int_to_ptr.vmem [resolvable:$true] %s3150_s13 }
0x1686   : > { %s4616_s4 = scalar_lea.vmem %s5591_s13, 128  ;;  %p4623_p2 = scmp.lt.s32.totalorder %s5591_s13, %s4621_s5 }
0x1687   : > { %p4617_p8 = scmp.ne.s32.totalorder %s5591_s13, %s4616_s4  ;;  %p4624_p10 = scmp.lt.s32.totalorder %s4622_s7, %s4616_s4 }
0x1689   : > { %p4618_p0 = pnand %p4617_p8, %p5729_p3  ;;  %p4625_p11 = por %p4624_p10, %p4623_p2 }
0x168b   : > { %p4619_p1 = pneg %p4618_p0 }
0x168d   : > { %p4626_p13 = pnand %p4625_p11, %p4619_p1 }
0x1699   : > { %v2794_v21 = vpop.f32.mrb[52].mxu0 }
0x169a   : > { %v2800_v22 = vadd.f32 %v2794_v21, %v5528_v39  ;;  %v3797_v23 = vpop.f32.mrb[53].mxu0 }
0x169b   : > { %v2797_v24 = vpop.f32.mrb[54].mxu0 }
0x169c   : > { %v3798_v25 = vpop.f32.mrb[55].mxu0 }
0x16fa   : > { %v2859_v26 = vpop.xlane.xlu0 %2858 }
0x16fb   : > { %4134 = vrcp.f32 %v2859_v26 }
0x16fe   : > { %v2864_v27 = vpop.permute.xlu0 %2863 }
0x16ff   : > { %v2869_v28 = vsel %vm1543_vm3, %v2864_v27, 0 }
0x1700   : > { %3806 = vmatpush3.bf16.msra.mxu0 %v2869_v28 }
0x1701   : > { %3817 = vmatprep.subr.bf16.mxu0 %v4765_v9 }
0x1705   : > { %v4135_v63 = vpop.eup %4134 }
0x1706   : > { %v2861_v53 = vmul.f32 %v4135_v63, %v4133_v17 }
0x1708   : > { %v2862_v30 = vpack.c.bf16 %v2861_v53, %v2861_v53 }
0x170a   : > { %3808 = vmatmul.mubr.msk.bf16.vlgmr.msra.gmra.mrb[56].mxu0 %vm1481_vm2, %v2862_v30 }
0x170b   : > { %3821 = vmatprep.mubr.msk.bf16.mxu0 %vm4766_vm1, %v4765_v9  ;;  %3818 = vmatpush3.bf16.msra.mxu0 %v4094_v54 }
0x170c   : > { %3819 = vmatprep.subr.bf16.mxu0 %v4765_v9 }
0x170f   : > { %3820 = vmatpush3.bf16.msra.mxu0 %v4095_v55 }
0x17dd   : > { %v2905_v31 = vpop.f32.mrb[56].mxu0 }
0x17de   : > { %v2911_v45 = vpack.c.bf16 %v2905_v31, %v2905_v31  ;;  %v3809_v32 = vpop.f32.mrb[57].mxu0 }
0x17df   : > { %v2908_v33 = vpop.f32.mrb[58].mxu0 }
0x17e0   : > { %v3810_v36 = vpop.f32.mrb[59].mxu0  ;;  %3814 = vmatmul.mubr.msk.bf16.vlgmr.msra.gmra.mrb[56].mxu1 %vm1481_vm2, %v2911_v45 }
0x17e1   : > { %3833 = vmatprep.mubr.msk.bf16.mxu1 %vm4766_vm1, %v4765_v9  ;;  %3826 = vmatpush3.bf16.msra.mxu1 %v4096_v56 }
0x17e2   : > { %3827 = vmatprep.subr.bf16.mxu1 %v4765_v9 }
0x18b3   : > { %v2952_v38 = vpop.f32.mrb[56].mxu1 }
0x18b4   : > { %v2958_v39 = vadd.f32 %v2952_v38, %v2800_v22  ;;  %v3815_v41 = vpop.f32.mrb[57].mxu1 }
0x18b5   : > { %v2955_v42 = vpop.f32.mrb[58].mxu1 }
0x18b6   : > { %v2965_v43 = vadd.f32 %v3534_v37, %v2958_v39  ;;  %v3816_v44 = vpop.f32.mrb[59].mxu1 }
0x18b8   : > { %v2966_v46 = vadd.f32 %v2965_v43, %v5435_v57  ;;  %v4097_v57 = vld [vmem:[%s4920_s17 + $0x8] sm:$0xff]  }
0x18b9   : > { %3828 = vmatpush3.bf16.msra.mxu1 %v4097_v57 }
0x18ba   : > { %v2969_v47 = vsel %vm1270_vm0, %v2966_v46, 0.0  ;;  %3829 = vmatprep.subr.bf16.mxu1 %v4765_v9 }
0x18bb   : > { %2970 = vadd.xlane.f32.xlu1 %v2969_v47 }
0x18bd   : > { %3830 = vmatpush3.bf16.msra.mxu1 %v4098_v3 }
0x18be   : > { %3831 = vmatprep.subr.bf16.mxu1 %v4765_v9 }
0x18c1   : > { %3832 = vmatpush3.bf16.msra.mxu1 %v4099_v4 }
0x1948   : > { %v2971_v48 = vpop.xlane.xlu1 %2970 }
0x1949   : > { %v2972_v49 = vmul.f32 0.03125, %v2971_v48 }
0x194b   : > { %v2973_v52 = vsub.f32 %v2966_v46, %v2972_v49 }
0x194d   : > { %v2974_v50 = vmul.f32 %v2973_v52, %v2973_v52 }
0x194f   : > { %v2975_v51 = vsel %vm1270_vm0, %v2974_v50, 0.0 }
0x1950   : > { %2976 = vadd.xlane.f32.xlu1 %v2975_v51 }
0x19dd   : > { %v2977_v58 = vpop.xlane.xlu1 %2976 }
0x19de   : > { %v2978_v59 = vmul.f32 0.03125, %v2977_v58 }
0x19e0   : > { %v2979_v60 = vadd.f32 1e-06, %v2978_v59 }
0x19e2   : > { %4136 = vrsqrt.f32 %v2979_v60 }
0x19ec   : > { %v4137_v29 = vpop.eup %4136 }
0x19ed   : > { %v2981_v62 = vmul.f32 %v4137_v29, %v2973_v52 }
0x19ef   : > { %v2988_v0 = vmul.f32 %v3535_v61, %v2981_v62 }
0x19f1   : > { %v2995_v2 = vadd.f32 %v3536_v1, %v2988_v0 }
0x19f3   : > { %v2996_v19 = vpack.c.bf16 %v2995_v2, %v2995_v2 }
0x19f5   : > { %3822 = vmatmul.mubr.msk.bf16.vlgmr.msra.gmra.mrb[60].mxu0 %vm1270_vm0, %v2996_v19 }
0x1ac8   : > { %v3052_v40 = vpop.f32.mrb[60].mxu0 }
0x1ac9   : > { %v3053_v6 = vadd.f32 %v3537_v5, %v3052_v40  ;;  %v3823_v7 = vpop.f32.mrb[61].mxu0 }
0x1aca   : > { %v3055_v8 = vpop.f32.mrb[62].mxu0 }
0x1acb   : > { %v3058_v10 = vmax.f32 %v3053_v6, 0.0  ;;  %v3824_v11 = vpop.f32.mrb[63].mxu0 }
0x1acd   : > { %v3059_v35 = vpack.c.bf16 %v3058_v10, %v3058_v10 }
0x1acf   : > { %3834 = vmatmul.mubr.msk.bf16.vlgmr.msra.gmra.mrb[60].mxu1 %vm3090_vm6, %v3059_v35 }
0x1ba2   : > { %v3128_v13 = vpop.f32.mrb[60].mxu1 }
0x1ba3   : > { %v3129_v9 = vadd.f32 %v3541_v12, %v3128_v13  ;;  %v3835_v14 = vpop.f32.mrb[61].mxu1 }
0x1ba4   : > { %v3131_v15 = vpop.f32.mrb[62].mxu1 }
0x1ba5   : > { %v3134_v16 = vadd.f32 %v3129_v9, %v2966_v46  ;;  %v3836_v17 = vpop.f32.mrb[63].mxu1 }
0x1ba7   : > { %3135 = vst.msk [vmem:[%s1192_s3] sm:$0xff] %vm1270_vm0, %v3134_v16 }
0x1ba8   : > { %4629 = shalt.err (!%p4626_p13)
}
0x1ba9   : > { %s4630_s14 = scalar_lea.hbm %s5589_s1, 128  ;;  %s4634_s2 = scalar_lea.hbm %s5728_s6, 256 }
0x1baa   : > { %p4631_p4 = scmp.ne.s32.totalorder %s5589_s1, %s4630_s14  ;;  %p4635_p5 = scmp.lt.u32.totalorder %s5589_s1, %s5728_s6 }
0x1bab   : > { %p4636_p7 = scmp.lt.u32.totalorder %s4634_s2, %s4630_s14  ;;  %p4638_p8 = scmp.lt.u32.totalorder %s4630_s14, %s5589_s1 }
0x1bac   : > { %p4632_p12 = pnand %p4631_p4, %p5729_p3 }
0x1bad   : > { %p4637_p9 = por %p4636_p7, %p4635_p5 }
0x1bae   : > { %p4633_p6 = pneg %p4632_p12 }
0x1baf   : > { %p4639_p0 = por %p4638_p8, %p4637_p9 }
0x1bb1   : > { %p4640_p1 = pnand %p4639_p0, %p4633_p6 }
0x1bb3   : > { %4643 = shalt.err (!%p4640_p1)
}
0x1bb4   : > { %3903 = dma.vmem_to_hbm [thread:$0]  (%p5729_p3), %s5591_s13, 128, %s5589_s1, %s3137_s8  }
0x1bb5 PF: > { %s3162_s7 = sand.u32 1, %s4702_s15   ;;  %p5730_p2 = scmp.ne.s32.totalorder %s5697_s22, 0 }
0x1bb6   : > { %p5731_p10 = scmp.ge.s32.totalorder %s4714_s0, 2  ;;  %s3163_s4 = scalar_lea.sflag [#allocation4], %s3162_s7 }
0x1bb8   : > { %p3959_p11 = pnand %p5731_p10, %p5730_p2 }
0x1bba   : > { %4697 = dma.done.wait (!%p3959_p11), %s3163_s4, 128  }
0x1bbb   : > { %4699 = vsyncadd (!%p3959_p11), %s3163_s4, 4294967168  ;;  %p82_p13 = scmp.ge.s32.totalorder %s5178_s19, 4   ;;  %s5732_s15 = smov %s4706_s16 }
0x1bbc   : > { %s5733_s16 = smov %s4710_s18  ;;  %s5734_s18 = smov %s5189_s23 }
0x1bbd   : > { %s5735_s0 = smov %s5178_s19  ;;  %84 = sbr.rel (!%p82_p13) target bundleno = 71 (0x47), region = 288 }
0x1bc4   :  { %3168 = vsyncpa [#allocation3], 1 }
0x1bc5   :  { %3170 = vsyncpa [#allocation3 + $0x1], 1 }
0x1bc6   :  { %3171 = vsyncpa [#allocation6], 1 }
0x1bc7   :  { %3172 = vsyncpa [#allocation9], 1 }
0x1bc8   :  { %3173 = vsyncpa [#allocation12], 1 }
0x1bc9   :  { %3174 = vsyncpa [#allocation15], 1 }
0x1bca   :  { %3175 = vsyncpa [#allocation18], 1 }
0x1bcb   :  { %3176 = vsyncpa [#allocation21], 1 }
0x1bcc   :  { %3177 = vsyncpa [#allocation24], 1 }
0x1bcd   :  { %3178 = vsyncpa [#allocation27], 1 }
0x1bce   :  { %3179 = vsyncpa [#allocation4], 1 }
0x1bcf   :  { %3181 = vsyncpa [#allocation4 + $0x1], 1 }

</bundles_post_ra>
